<compile_context>
chip_gen: v7x
topology: tpu7x:2x2x1
jax: 0.10.0
libtpu: 0.0.40
codegen_flags: <defaults>
</compile_context>

<pallas_src>
import functools

import jax
import jax.numpy as jnp
from jax import lax
from jax.experimental import pallas as pl
from jax.experimental.pallas import tpu as pltpu


def _inverted_residual_kernel(x_ref, w1_ref, s1_ref, b1_ref,
                              wd_ref, s2_ref, b2_ref,
                              w3_ref, s3_ref, b3_ref,
                              o_ref, *, add_residual: bool):
    _, H, W, Cin = x_ref.shape
    Chid = w1_ref.shape[1]
    Cout = w3_ref.shape[1]
    HW = H * W

    # Input kept in f32 (needed for the residual add); cast at the matmul.
    x = x_ref[0].reshape(HW, Cin).astype(jnp.float32)

    # ---- 1x1 expand conv (bf16 MXU, f32 accumulate) + BN + ReLU6 ----
    h = jnp.dot(x.astype(jnp.bfloat16), w1_ref[...],
                preferred_element_type=jnp.float32)            # (HW, Chid)
    h = jnp.clip(h * s1_ref[...] + b1_ref[...], 0.0, 6.0)

    # ---- 3x3 depthwise conv (stride 1, padding 1) + BN + ReLU6 ----
    # Column (+-1) taps: sublane roll over the flattened (HW, Chid) slab.
    # Rolling by 1 wraps the previous row's last pixel into column 0, which is
    # exactly the position the padding mask zeroes out (and vice versa), so a
    # single roll + mask gives the padded tap with no scratch buffer.
    wd = wd_ref[...]                                           # (9, Chid) f32
    r = lax.broadcasted_iota(jnp.int32, (HW, 1), 0)
    j = r % W
    h_l = jnp.where(j == 0,     0.0, pltpu.roll(h, 1, axis=0))       # tap j-1
    h_r = jnp.where(j == W - 1, 0.0, pltpu.roll(h, HW - 1, axis=0))  # tap j+1

    # Per-kernel-row weighted sums (VPU FMAs, f32).
    rc0 = h_l * wd[0:1] + h * wd[1:2] + h_r * wd[2:3]          # kh = 0
    rc1 = h_l * wd[3:4] + h * wd[4:5] + h_r * wd[5:6]          # kh = 1
    rc2 = h_l * wd[6:7] + h * wd[7:8] + h_r * wd[8:9]          # kh = 2

    # Row (+-1) taps: roll the flattened slab by a whole image row (+-W)
    # and mask the first / last image row (zero padding).
    acc = rc1
    acc = acc + jnp.where(r < W,       0.0, pltpu.roll(rc0, W, axis=0))
    acc = acc + jnp.where(r >= HW - W, 0.0, pltpu.roll(rc2, HW - W, axis=0))

    d = jnp.clip(acc * s2_ref[...] + b2_ref[...], 0.0, 6.0)     # (HW, Chid)

    # ---- 1x1 project conv (bf16 MXU, f32 accumulate) + BN ----
    y = jnp.dot(d.astype(jnp.bfloat16), w3_ref[...],
                preferred_element_type=jnp.float32)             # (HW, Cout)
    y = y * s3_ref[...] + b3_ref[...]

    if add_residual:
        y = y + x

    o_ref[0] = y.reshape(H, W, Cout).astype(o_ref.dtype)


def inverted_residual(x_nchw, params, *, stride, inp, oup):
    """Pallas forward pass. x_nchw: (N, Cin, H, W) float32."""
    assert stride in (1, 2)
    # TODO(synk): stride=2 depthwise-subsampling path not implemented in-kernel.
    assert stride == 1, "only stride=1 is implemented in the Pallas kernel"
    use_res_connect = (stride == 1) and (inp == oup)

    w1, s1, b1, wd, s2, b2, w3, s3, b3 = params
    N, Cin, H, W = x_nchw.shape
    Chid = w1.shape[1]
    Cout = w3.shape[1]

    # TODO(synk): keep the surrounding model NHWC end-to-end so these
    # transposes (full HBM round-trips of the activation) disappear.
    x = jnp.transpose(x_nchw, (0, 2, 3, 1)).astype(jnp.float32)   # NHWC

    # bf16 weights for the two MXU matmuls; depthwise weights as (9, Chid).
    w1b = w1.astype(jnp.bfloat16)
    w3b = w3.astype(jnp.bfloat16)
    wd9 = wd.reshape(9, Chid).astype(jnp.float32)

    kernel = functools.partial(_inverted_residual_kernel,
                               add_residual=use_res_connect)

    def full_spec(a):
        nd = a.ndim
        return pl.BlockSpec(a.shape, lambda n, _nd=nd: (0,) * _nd)

    flops = 2 * N * H * W * (Cin * Chid + 9 * Chid + Chid * Cout)
    bytes_accessed = int(
        N * H * W * Cin * 4 + N * H * W * Cout * 4 +
        w1b.size * 2 + w3b.size * 2 + wd9.size * 4 +
        (s1.size + b1.size + s2.size + b2.size + s3.size + b3.size) * 4)
    cost = pl.CostEstimate(flops=int(flops), transcendentals=0,
                           bytes_accessed=bytes_accessed)

    # TODO(synk): for production MobileNet shapes (e.g. 112x112x96), add a
    # spatial (row-tile + halo) grid axis so the live set fits v7x's 64 MiB
    # VMEM and the pipeline has enough steps to hide HBM traffic.
    out_nhwc = pl.pallas_call(
        kernel,
        out_shape=jax.ShapeDtypeStruct((N, H, W, Cout), jnp.float32),
        grid_spec=pltpu.PrefetchScalarGridSpec(
            num_scalar_prefetch=0,
            grid=(N,),
            in_specs=[pl.BlockSpec((1, H, W, Cin), lambda n: (n, 0, 0, 0)),
                      full_spec(w1b), full_spec(s1), full_spec(b1),
                      full_spec(wd9), full_spec(s2), full_spec(b2),
                      full_spec(w3b), full_spec(s3), full_spec(b3)],
            out_specs=pl.BlockSpec((1, H, W, Cout), lambda n: (n, 0, 0, 0)),
        ),
        compiler_params=pltpu.CompilerParams(
            dimension_semantics=("parallel",)),
        cost_estimate=cost,
    )(x, w1b, s1, b1, wd9, s2, b2, w3b, s3, b3)

    return jnp.transpose(out_nhwc, (0, 3, 1, 2))  # back to NCHW


def init_params(key, inp, oup, expand_ratio):
    """Deterministic synthetic parameters (BN folded into scale/bias)."""
    hid = inp * expand_ratio
    ks = jax.random.split(key, 15)

    def bn_fold(k0, k1, k2, k3, c):
        gamma = jax.random.uniform(k0, (c,), minval=0.5, maxval=1.5)
        beta = 0.1 * jax.random.normal(k1, (c,))
        mean = 0.1 * jax.random.normal(k2, (c,))
        var = jax.random.uniform(k3, (c,), minval=0.5, maxval=1.5)
        scale = gamma / jnp.sqrt(var + 1e-5)
        bias = beta - mean * scale
        return scale.reshape(1, c).astype(jnp.float32), \
               bias.reshape(1, c).astype(jnp.float32)

    w1 = (0.2 * jax.random.normal(ks[0], (inp, hid))).astype(jnp.float32)
    s1, b1 = bn_fold(ks[1], ks[2], ks[3], ks[4], hid)
    wd = (0.2 * jax.random.normal(ks[5], (3, 3, hid))).astype(jnp.float32)
    s2, b2 = bn_fold(ks[6], ks[7], ks[8], ks[9], hid)
    w3 = (0.2 * jax.random.normal(ks[10], (hid, oup))).astype(jnp.float32)
    s3, b3 = bn_fold(ks[11], ks[12], ks[13], ks[14], oup)
    return (w1, s1, b1, wd, s2, b2, w3, s3, b3)


def reference(x_nchw, params, *, stride, inp, oup):
    """Pure-JAX reference (same math as the PyTorch module, BN folded, f32)."""
    w1, s1, b1, wd, s2, b2, w3, s3, b3 = params
    use_res_connect = (stride == 1) and (inp == oup)
    Chid = w1.shape[1]
    x = jnp.transpose(x_nchw, (0, 2, 3, 1))
    h = jnp.einsum('nhwc,cd->nhwd', x, w1)
    h = jnp.clip(h * s1 + b1, 0.0, 6.0)
    dw = wd.reshape(3, 3, 1, Chid)
    d = lax.conv_general_dilated(h, dw, window_strides=(stride, stride),
                                 padding=((1, 1), (1, 1)),
                                 dimension_numbers=('NHWC', 'HWIO', 'NHWC'),
                                 feature_group_count=Chid)
    d = jnp.clip(d * s2 + b2, 0.0, 6.0)
    y = jnp.einsum('nhwc,cd->nhwd', d, w3)
    y = y * s3 + b3
    if use_res_connect:
        y = y + x
    return jnp.transpose(y, (0, 3, 1, 2))


if __name__ == "__main__":
    key = jax.random.PRNGKey(0)
    k_x, k_p1, k_p2 = jax.random.split(key, 3)

    N, H, W = 2, 16, 16
    x = jax.random.normal(k_x, (N, 4, H, W), dtype=jnp.float32)

    # Tolerance covers the bf16 MXU operands (f32 accumulation) vs f32 ref.
    ATOL = 5e-2
    RTOL = 5e-2

    # Config A: stride=1, inp==oup  -> residual path.
    pA = init_params(k_p1, inp=4, oup=4, expand_ratio=6)
    outA = jax.block_until_ready(
        inverted_residual(x, pA, stride=1, inp=4, oup=4))
    refA = jax.block_until_ready(reference(x, pA, stride=1, inp=4, oup=4))
    assert outA.shape == (N, 4, H, W)
    assert jnp.allclose(outA, refA, atol=ATOL, rtol=RTOL), "mismatch (residual)"

    # Config B: stride=1, inp!=oup -> no residual.
    pB = init_params(k_p2, inp=4, oup=8, expand_ratio=6)
    outB = jax.block_until_ready(
        inverted_residual(x, pB, stride=1, inp=4, oup=8))
    refB = jax.block_until_ready(reference(x, pB, stride=1, inp=4, oup=8))
    assert outB.shape == (N, 8, H, W)
    assert jnp.allclose(outB, refB, atol=ATOL, rtol=RTOL), "mismatch (no-res)"

    print("KERNEL_OK")
</pallas_src>

<mosaic_0001>
module attributes {stable_mosaic.version = 11 : i64} {
  func.func @_inverted_residual_kernel(%arg0: i32, %arg1: memref<1x16x16x4xf32, #tpu.memory_space<vmem>>, %arg2: memref<4x24xbf16, #tpu.memory_space<vmem>>, %arg3: memref<1x24xf32, #tpu.memory_space<vmem>>, %arg4: memref<1x24xf32, #tpu.memory_space<vmem>>, %arg5: memref<9x24xf32, #tpu.memory_space<vmem>>, %arg6: memref<1x24xf32, #tpu.memory_space<vmem>>, %arg7: memref<1x24xf32, #tpu.memory_space<vmem>>, %arg8: memref<24x4xbf16, #tpu.memory_space<vmem>>, %arg9: memref<1x4xf32, #tpu.memory_space<vmem>>, %arg10: memref<1x4xf32, #tpu.memory_space<vmem>>, %arg11: memref<1x16x16x4xf32, #tpu.memory_space<vmem>>) attributes {dimension_semantics = [#tpu.dimension_semantics<parallel>], iteration_bounds = array<i64: 2>, scalar_prefetch = 0 : i64, scratch_operands = 0 : i64, tpu.core_type = #tpu.core_type<tc>, window_params = [{transform_indices = @transform_0, window_bounds = array<i64: 1, 16, 16, 4>}, {pipeline_mode = #tpu.pipeline_mode<synchronous>, transform_indices = @transform_1, window_bounds = array<i64: 4, 24>}, {pipeline_mode = #tpu.pipeline_mode<synchronous>, transform_indices = @transform_2, window_bounds = array<i64: 1, 24>}, {pipeline_mode = #tpu.pipeline_mode<synchronous>, transform_indices = @transform_3, window_bounds = array<i64: 1, 24>}, {pipeline_mode = #tpu.pipeline_mode<synchronous>, transform_indices = @transform_4, window_bounds = array<i64: 9, 24>}, {pipeline_mode = #tpu.pipeline_mode<synchronous>, transform_indices = @transform_5, window_bounds = array<i64: 1, 24>}, {pipeline_mode = #tpu.pipeline_mode<synchronous>, transform_indices = @transform_6, window_bounds = array<i64: 1, 24>}, {pipeline_mode = #tpu.pipeline_mode<synchronous>, transform_indices = @transform_7, window_bounds = array<i64: 24, 4>}, {pipeline_mode = #tpu.pipeline_mode<synchronous>, transform_indices = @transform_8, window_bounds = array<i64: 1, 4>}, {pipeline_mode = #tpu.pipeline_mode<synchronous>, transform_indices = @transform_9, window_bounds = array<i64: 1, 4>}, {transform_indices = @transform_10, window_bounds = array<i64: 1, 16, 16, 4>}]} {
    %c0 = arith.constant 0 : index
    %c0_0 = arith.constant 0 : index
    %c0_1 = arith.constant 0 : index
    %c0_2 = arith.constant 0 : index
    %0 = vector.load %arg1[%c0, %c0_0, %c0_1, %c0_2] : memref<1x16x16x4xf32, #tpu.memory_space<vmem>>, vector<1x16x16x4xf32>
    %1 = vector.shape_cast %0 : vector<1x16x16x4xf32> to vector<16x16x4xf32>
    %2 = vector.shape_cast %1 : vector<16x16x4xf32> to vector<256x4xf32>
    %3 = arith.truncf %2 : vector<256x4xf32> to vector<256x4xbf16>
    %c0_3 = arith.constant 0 : index
    %c0_4 = arith.constant 0 : index
    %4 = vector.load %arg2[%c0_3, %c0_4] : memref<4x24xbf16, #tpu.memory_space<vmem>>, vector<4x24xbf16>
    %cst = arith.constant dense<0.000000e+00> : vector<256x24xf32>
    %5 = tpu.matmul %3, %4, %cst {dimension_numbers = #tpu.dot_dimension_numbers<[1], [0], [0], [1], [0, 0, 1, 1], [], []>} : vector<256x4xbf16>, vector<4x24xbf16>, vector<256x24xf32> -> vector<256x24xf32>
    %c0_5 = arith.constant 0 : index
    %c0_6 = arith.constant 0 : index
    %6 = vector.load %arg3[%c0_5, %c0_6] : memref<1x24xf32, #tpu.memory_space<vmem>>, vector<1x24xf32>
    %7 = vector.broadcast %6 : vector<1x24xf32> to vector<256x24xf32>
    %8 = arith.mulf %5, %7 : vector<256x24xf32>
    %c0_7 = arith.constant 0 : index
    %c0_8 = arith.constant 0 : index
    %9 = vector.load %arg4[%c0_7, %c0_8] : memref<1x24xf32, #tpu.memory_space<vmem>>, vector<1x24xf32>
    %10 = vector.broadcast %9 : vector<1x24xf32> to vector<256x24xf32>
    %11 = arith.addf %8, %10 : vector<256x24xf32>
    %cst_9 = arith.constant 0.000000e+00 : f32
    %cst_10 = arith.constant 6.000000e+00 : f32
    %12 = vector.broadcast %cst_9 : f32 to vector<256x24xf32>
    %13 = arith.maximumf %12, %11 : vector<256x24xf32>
    %14 = vector.broadcast %cst_10 : f32 to vector<256x24xf32>
    %15 = arith.minimumf %14, %13 : vector<256x24xf32>
    %c0_11 = arith.constant 0 : index
    %c0_12 = arith.constant 0 : index
    %16 = vector.load %arg5[%c0_11, %c0_12] : memref<9x24xf32, #tpu.memory_space<vmem>>, vector<9x24xf32>
    %17 = tpu.iota {dimensions = array<i32: 0>} : vector<256x1xi32>
    %c16_i32 = arith.constant 16 : i32
    %c0_i32 = arith.constant 0 : i32
    %18 = arith.cmpi eq, %c16_i32, %c0_i32 : i32
    %c1_i32 = arith.constant 1 : i32
    %19 = arith.select %18, %c1_i32, %c16_i32 : i32
    %20 = vector.broadcast %19 : i32 to vector<256x1xi32>
    %21 = arith.remsi %17, %20 : vector<256x1xi32>
    %c0_i32_13 = arith.constant 0 : i32
    %22 = vector.broadcast %c0_i32_13 : i32 to vector<256x1xi32>
    %23 = arith.cmpi ne, %21, %22 : vector<256x1xi32>
    %c0_i32_14 = arith.constant 0 : i32
    %24 = vector.broadcast %c0_i32_14 : i32 to vector<256x1xi32>
    %25 = arith.cmpi slt, %21, %24 : vector<256x1xi32>
    %c0_i32_15 = arith.constant 0 : i32
    %26 = arith.cmpi slt, %19, %c0_i32_15 : i32
    %27 = vector.broadcast %26 : i1 to vector<256x1xi1>
    %28 = vector.broadcast %27 : vector<256x1xi1> to vector<256x1xi1>
    %29 = arith.xori %25, %28 : vector<256x1xi1>
    %30 = arith.andi %29, %23 : vector<256x1xi1>
    %31 = vector.broadcast %19 : i32 to vector<256x1xi32>
    %32 = arith.addi %21, %31 : vector<256x1xi32>
    %33 = arith.select %30, %32, %21 : vector<256x1xi1>, vector<256x1xi32>
    %c0_i32_16 = arith.constant 0 : i32
    %34 = vector.broadcast %c0_i32_16 : i32 to vector<256x1xi32>
    %35 = arith.cmpi eq, %33, %34 : vector<256x1xi32>
    %c1_i32_17 = arith.constant 1 : i32
    %36 = tpu.dynamic_rotate %15 by %c1_i32_17 dim 0 : vector<256x24xf32>, i32 -> vector<256x24xf32>
    %cst_18 = arith.constant 0.000000e+00 : f32
    %37 = vector.shape_cast %35 : vector<256x1xi1> to vector<256x1xi1>
    %38 = vector.broadcast %37 : vector<256x1xi1> to vector<256x24xi1>
    %39 = vector.broadcast %cst_18 : f32 to vector<256x24xf32>
    %40 = arith.select %38, %39, %36 : vector<256x24xi1>, vector<256x24xf32>
    %c15_i32 = arith.constant 15 : i32
    %41 = vector.broadcast %c15_i32 : i32 to vector<256x1xi32>
    %42 = arith.cmpi eq, %33, %41 : vector<256x1xi32>
    %c255_i32 = arith.constant 255 : i32
    %43 = tpu.dynamic_rotate %15 by %c255_i32 dim 0 : vector<256x24xf32>, i32 -> vector<256x24xf32>
    %cst_19 = arith.constant 0.000000e+00 : f32
    %44 = vector.shape_cast %42 : vector<256x1xi1> to vector<256x1xi1>
    %45 = vector.broadcast %44 : vector<256x1xi1> to vector<256x24xi1>
    %46 = vector.broadcast %cst_19 : f32 to vector<256x24xf32>
    %47 = arith.select %45, %46, %43 : vector<256x24xi1>, vector<256x24xf32>
    %48 = vector.extract_strided_slice %16 {offsets = [0, 0], sizes = [1, 24], strides = [1, 1]} : vector<9x24xf32> to vector<1x24xf32>
    %49 = vector.broadcast %48 : vector<1x24xf32> to vector<256x24xf32>
    %50 = arith.mulf %40, %49 : vector<256x24xf32>
    %51 = vector.extract_strided_slice %16 {offsets = [1, 0], sizes = [1, 24], strides = [1, 1]} : vector<9x24xf32> to vector<1x24xf32>
    %52 = vector.broadcast %51 : vector<1x24xf32> to vector<256x24xf32>
    %53 = arith.mulf %15, %52 : vector<256x24xf32>
    %54 = arith.addf %50, %53 : vector<256x24xf32>
    %55 = vector.extract_strided_slice %16 {offsets = [2, 0], sizes = [1, 24], strides = [1, 1]} : vector<9x24xf32> to vector<1x24xf32>
    %56 = vector.broadcast %55 : vector<1x24xf32> to vector<256x24xf32>
    %57 = arith.mulf %47, %56 : vector<256x24xf32>
    %58 = arith.addf %54, %57 : vector<256x24xf32>
    %59 = vector.extract_strided_slice %16 {offsets = [3, 0], sizes = [1, 24], strides = [1, 1]} : vector<9x24xf32> to vector<1x24xf32>
    %60 = vector.broadcast %59 : vector<1x24xf32> to vector<256x24xf32>
    %61 = arith.mulf %40, %60 : vector<256x24xf32>
    %62 = vector.extract_strided_slice %16 {offsets = [4, 0], sizes = [1, 24], strides = [1, 1]} : vector<9x24xf32> to vector<1x24xf32>
    %63 = vector.broadcast %62 : vector<1x24xf32> to vector<256x24xf32>
    %64 = arith.mulf %15, %63 : vector<256x24xf32>
    %65 = arith.addf %61, %64 : vector<256x24xf32>
    %66 = vector.extract_strided_slice %16 {offsets = [5, 0], sizes = [1, 24], strides = [1, 1]} : vector<9x24xf32> to vector<1x24xf32>
    %67 = vector.broadcast %66 : vector<1x24xf32> to vector<256x24xf32>
    %68 = arith.mulf %47, %67 : vector<256x24xf32>
    %69 = arith.addf %65, %68 : vector<256x24xf32>
    %70 = vector.extract_strided_slice %16 {offsets = [6, 0], sizes = [1, 24], strides = [1, 1]} : vector<9x24xf32> to vector<1x24xf32>
    %71 = vector.broadcast %70 : vector<1x24xf32> to vector<256x24xf32>
    %72 = arith.mulf %40, %71 : vector<256x24xf32>
    %73 = vector.extract_strided_slice %16 {offsets = [7, 0], sizes = [1, 24], strides = [1, 1]} : vector<9x24xf32> to vector<1x24xf32>
    %74 = vector.broadcast %73 : vector<1x24xf32> to vector<256x24xf32>
    %75 = arith.mulf %15, %74 : vector<256x24xf32>
    %76 = arith.addf %72, %75 : vector<256x24xf32>
    %77 = vector.extract_strided_slice %16 {offsets = [8, 0], sizes = [1, 24], strides = [1, 1]} : vector<9x24xf32> to vector<1x24xf32>
    %78 = vector.broadcast %77 : vector<1x24xf32> to vector<256x24xf32>
    %79 = arith.mulf %47, %78 : vector<256x24xf32>
    %80 = arith.addf %76, %79 : vector<256x24xf32>
    %c16_i32_20 = arith.constant 16 : i32
    %81 = vector.broadcast %c16_i32_20 : i32 to vector<256x1xi32>
    %82 = arith.cmpi slt, %17, %81 : vector<256x1xi32>
    %c16_i32_21 = arith.constant 16 : i32
    %83 = tpu.dynamic_rotate %58 by %c16_i32_21 dim 0 : vector<256x24xf32>, i32 -> vector<256x24xf32>
    %cst_22 = arith.constant 0.000000e+00 : f32
    %84 = vector.shape_cast %82 : vector<256x1xi1> to vector<256x1xi1>
    %85 = vector.broadcast %84 : vector<256x1xi1> to vector<256x24xi1>
    %86 = vector.broadcast %cst_22 : f32 to vector<256x24xf32>
    %87 = arith.select %85, %86, %83 : vector<256x24xi1>, vector<256x24xf32>
    %88 = arith.addf %69, %87 : vector<256x24xf32>
    %c240_i32 = arith.constant 240 : i32
    %89 = vector.broadcast %c240_i32 : i32 to vector<256x1xi32>
    %90 = arith.cmpi sge, %17, %89 : vector<256x1xi32>
    %c240_i32_23 = arith.constant 240 : i32
    %91 = tpu.dynamic_rotate %80 by %c240_i32_23 dim 0 : vector<256x24xf32>, i32 -> vector<256x24xf32>
    %cst_24 = arith.constant 0.000000e+00 : f32
    %92 = vector.shape_cast %90 : vector<256x1xi1> to vector<256x1xi1>
    %93 = vector.broadcast %92 : vector<256x1xi1> to vector<256x24xi1>
    %94 = vector.broadcast %cst_24 : f32 to vector<256x24xf32>
    %95 = arith.select %93, %94, %91 : vector<256x24xi1>, vector<256x24xf32>
    %96 = arith.addf %88, %95 : vector<256x24xf32>
    %c0_25 = arith.constant 0 : index
    %c0_26 = arith.constant 0 : index
    %97 = vector.load %arg6[%c0_25, %c0_26] : memref<1x24xf32, #tpu.memory_space<vmem>>, vector<1x24xf32>
    %98 = vector.broadcast %97 : vector<1x24xf32> to vector<256x24xf32>
    %99 = arith.mulf %96, %98 : vector<256x24xf32>
    %c0_27 = arith.constant 0 : index
    %c0_28 = arith.constant 0 : index
    %100 = vector.load %arg7[%c0_27, %c0_28] : memref<1x24xf32, #tpu.memory_space<vmem>>, vector<1x24xf32>
    %101 = vector.broadcast %100 : vector<1x24xf32> to vector<256x24xf32>
    %102 = arith.addf %99, %101 : vector<256x24xf32>
    %cst_29 = arith.constant 0.000000e+00 : f32
    %cst_30 = arith.constant 6.000000e+00 : f32
    %103 = vector.broadcast %cst_29 : f32 to vector<256x24xf32>
    %104 = arith.maximumf %103, %102 : vector<256x24xf32>
    %105 = vector.broadcast %cst_30 : f32 to vector<256x24xf32>
    %106 = arith.minimumf %105, %104 : vector<256x24xf32>
    %107 = arith.truncf %106 : vector<256x24xf32> to vector<256x24xbf16>
    %c0_31 = arith.constant 0 : index
    %c0_32 = arith.constant 0 : index
    %108 = vector.load %arg8[%c0_31, %c0_32] : memref<24x4xbf16, #tpu.memory_space<vmem>>, vector<24x4xbf16>
    %cst_33 = arith.constant dense<0.000000e+00> : vector<256x4xf32>
    %109 = tpu.matmul %107, %108, %cst_33 {dimension_numbers = #tpu.dot_dimension_numbers<[1], [0], [0], [1], [0, 0, 1, 1], [], []>} : vector<256x24xbf16>, vector<24x4xbf16>, vector<256x4xf32> -> vector<256x4xf32>
    %c0_34 = arith.constant 0 : index
    %c0_35 = arith.constant 0 : index
    %110 = vector.load %arg9[%c0_34, %c0_35] : memref<1x4xf32, #tpu.memory_space<vmem>>, vector<1x4xf32>
    %111 = vector.broadcast %110 : vector<1x4xf32> to vector<256x4xf32>
    %112 = arith.mulf %109, %111 : vector<256x4xf32>
    %c0_36 = arith.constant 0 : index
    %c0_37 = arith.constant 0 : index
    %113 = vector.load %arg10[%c0_36, %c0_37] : memref<1x4xf32, #tpu.memory_space<vmem>>, vector<1x4xf32>
    %114 = vector.broadcast %113 : vector<1x4xf32> to vector<256x4xf32>
    %115 = arith.addf %112, %114 : vector<256x4xf32>
    %116 = arith.addf %115, %2 : vector<256x4xf32>
    %117 = vector.shape_cast %116 : vector<256x4xf32> to vector<16x16x4xf32>
    %c0_38 = arith.constant 0 : index
    %c0_39 = arith.constant 0 : index
    %c0_40 = arith.constant 0 : index
    %c0_41 = arith.constant 0 : index
    %118 = vector.load %arg11[%c0_38, %c0_39, %c0_40, %c0_41] : memref<1x16x16x4xf32, #tpu.memory_space<vmem>>, vector<1x16x16x4xf32>
    %119 = vector.shape_cast %118 : vector<1x16x16x4xf32> to vector<16x16x4xf32>
    %120 = vector.shape_cast %117 : vector<16x16x4xf32> to vector<1x16x16x4xf32>
    tpu.vector_store %arg11[%c0_38, %c0_39, %c0_40, %c0_41], %120 {strides = array<i32>} : memref<1x16x16x4xf32, #tpu.memory_space<vmem>>, vector<1x16x16x4xf32>,
    return
  }
  func.func @transform_0(%arg0: i32) -> (i32, i32, i32, i32) {
    %c0_i32 = arith.constant 0 : i32
    %c0_i32_0 = arith.constant 0 : i32
    %c0_i32_1 = arith.constant 0 : i32
    %c0_i32_2 = arith.constant 0 : i32
    return %arg0, %c0_i32, %c0_i32_0, %c0_i32_1 : i32, i32, i32, i32
  }
  func.func @transform_1(%arg0: i32) -> (i32, i32) {
    %c0_i32 = arith.constant 0 : i32
    %c0_i32_0 = arith.constant 0 : i32
    %c0_i32_1 = arith.constant 0 : i32
    return %c0_i32, %c0_i32_0 : i32, i32
  }
  func.func @transform_2(%arg0: i32) -> (i32, i32) {
    %c0_i32 = arith.constant 0 : i32
    %c0_i32_0 = arith.constant 0 : i32
    %c0_i32_1 = arith.constant 0 : i32
    return %c0_i32, %c0_i32_0 : i32, i32
  }
  func.func @transform_3(%arg0: i32) -> (i32, i32) {
    %c0_i32 = arith.constant 0 : i32
    %c0_i32_0 = arith.constant 0 : i32
    %c0_i32_1 = arith.constant 0 : i32
    return %c0_i32, %c0_i32_0 : i32, i32
  }
  func.func @transform_4(%arg0: i32) -> (i32, i32) {
    %c0_i32 = arith.constant 0 : i32
    %c0_i32_0 = arith.constant 0 : i32
    %c0_i32_1 = arith.constant 0 : i32
    return %c0_i32, %c0_i32_0 : i32, i32
  }
  func.func @transform_5(%arg0: i32) -> (i32, i32) {
    %c0_i32 = arith.constant 0 : i32
    %c0_i32_0 = arith.constant 0 : i32
    %c0_i32_1 = arith.constant 0 : i32
    return %c0_i32, %c0_i32_0 : i32, i32
  }
  func.func @transform_6(%arg0: i32) -> (i32, i32) {
    %c0_i32 = arith.constant 0 : i32
    %c0_i32_0 = arith.constant 0 : i32
    %c0_i32_1 = arith.constant 0 : i32
    return %c0_i32, %c0_i32_0 : i32, i32
  }
  func.func @transform_7(%arg0: i32) -> (i32, i32) {
    %c0_i32 = arith.constant 0 : i32
    %c0_i32_0 = arith.constant 0 : i32
    %c0_i32_1 = arith.constant 0 : i32
    return %c0_i32, %c0_i32_0 : i32, i32
  }
  func.func @transform_8(%arg0: i32) -> (i32, i32) {
    %c0_i32 = arith.constant 0 : i32
    %c0_i32_0 = arith.constant 0 : i32
    %c0_i32_1 = arith.constant 0 : i32
    return %c0_i32, %c0_i32_0 : i32, i32
  }
  func.func @transform_9(%arg0: i32) -> (i32, i32) {
    %c0_i32 = arith.constant 0 : i32
    %c0_i32_0 = arith.constant 0 : i32
    %c0_i32_1 = arith.constant 0 : i32
    return %c0_i32, %c0_i32_0 : i32, i32
  }
  func.func @transform_10(%arg0: i32) -> (i32, i32, i32, i32) {
    %c0_i32 = arith.constant 0 : i32
    %c0_i32_0 = arith.constant 0 : i32
    %c0_i32_1 = arith.constant 0 : i32
    %c0_i32_2 = arith.constant 0 : i32
    return %arg0, %c0_i32, %c0_i32_0, %c0_i32_1 : i32, i32, i32, i32
  }
}

</mosaic_0001>

<bundles_post_ra>
// kernel: tpu_custom_call.1
= control target key start
LH: loop header
LB: loop body
LE: loop exit
PB: predicated region body
PF: predicated region fallthrough
CT: control target
= control target key end

     0   :  { %s3254_s13 = smov 0   ;;  %s5023_s0 = inlined_call_operand.vmem [shape: f32[2,16,16,4], index: 0, kind: input, shape index: {}]   ;;  %s5024_s1 = inlined_call_operand.vmem [shape: bf16[4,24], index: 1, kind: input, shape index: {}]   ;;  %s5025_s2 = inlined_call_operand.vmem [shape: f32[1,24], index: 2, kind: input, shape index: {}]   ;;  %s5026_s3 = inlined_call_operand.vmem [shape: f32[1,24], index: 3, kind: input, shape index: {}]   ;;  %s5027_s4 = inlined_call_operand.vmem [shape: f32[9,24], index: 4, kind: input, shape index: {}]   ;;  %s5028_s5 = inlined_call_operand.vmem [shape: f32[1,24], index: 5, kind: input, shape index: {}]   ;;  %s5029_s6 = inlined_call_operand.vmem [shape: f32[1,24], index: 6, kind: input, shape index: {}]   ;;  %s5030_s7 = inlined_call_operand.vmem [shape: bf16[24,4], index: 7, kind: input, shape index: {}]   ;;  %s5031_s8 = inlined_call_operand.vmem [shape: f32[1,4], index: 8, kind: input, shape index: {}]   ;;  %s5032_s9 = inlined_call_operand.vmem [shape: f32[1,4], index: 9, kind: input, shape index: {}]   ;;  %s5033_s10 = inlined_call_operand.vmem [shape: f32[2,16,16,4], index: 10, kind: output, shape index: {}]  }
   0x1 LB: > { %s2988_s14 = sadd.s32 4294967295, %s3197_s13   ;;  %p2992_p0 = scmp.ge.s32.totalorder %s3197_s13, 1  ;;  %s3197_s13 = sphi %s3254_s13, %s20_s13  }
   0x2   : > { %p312_p1 = scmp.lt.s32.totalorder %s3197_s13, 3 }
   0x4   : > { %p313_p2 = pnand %p2992_p0, %p312_p1 }
   0x6   : > { %316 = sbr.rel (%p313_p2) target bundleno = 732 (0x2dc), region = 60 }
   0xd   : > { %v409_v0 = vld [vmem:[%s5024_s1] sm:$0x3]  ;;  %vm459_vm0 = vcmask 1041408   ;;  %p350_p3 = scmp.lt.s32.totalorder %s2988_s14, 1  ;;  %vm410_vm1 = vcmask 31744   ;;  %v768_v50 = vlaneseq  ;;  %vm2626_vm2 = vcmask 1043456  }
   0xe   : > { %3147 = vmatprep.subr.msk.bf16.mxu0 %vm459_vm0, %v409_v0  ;;  %v461_v1 = vsel %vm459_vm0, %v409_v0, 0  ;;  %v3329_v53 = vld [vmem:[%s5027_s4] sm:$0xff] }
   0xf   : > { %3078 = vmatpush3.bf16.msra.mxu0 %v461_v1  ;;  %s5368_s14 = smov (!%p350_p3, %s2988_s14), 1  ;;  %v3323_v51 = vshrl.u32 %v768_v50, 7 }
  0x10   : > { %s3040_s17 = sshll.u32 %s5368_s14, 8 }
  0x11   : > { %s3273_s20 = scalar_lea.vmem %s5023_s0, %s3040_s17  ;;  %v1609_v52 = vsub.s32 1, %v3323_v51  ;;  %v1781_v54 = vsub.s32 4, %v3323_v51  ;;  %v1745_v56 = vsub.s32 3, %v3323_v51  ;;  %v1953_v57 = vsub.s32 7, %v3323_v51  ;;  %s4862_s27 = scalar_lea.vmem %s5033_s10, %s3040_s17 }
  0x12   : > { %v361_v2 = vld [vmem:[%s3273_s20] sm:$0xff]  ;;  %v362_v3 = vld [vmem:[%s3273_s20 + $0x8] sm:$0xff]  ;;  %v363_v4 = vld [vmem:[%s3273_s20 + $0x10] sm:$0xff]  ;;  %v1849_v59 = vsub.s32 5, %v3323_v51  ;;  %v1573_v60 = vsub.s32 0, %v3323_v51  ;;  %v1917_v61 = vsub.s32 6, %v3323_v51 }
  0x13   : > { %v393_v5 = vpack.c.bf16 %v362_v3, %v361_v2  ;;  %v364_v6 = vld [vmem:[%s3273_s20 + $0x18] sm:$0xff]  ;;  %v365_v7 = vld [vmem:[%s3273_s20 + $0x20] sm:$0xff]  ;;  %v366_v8 = vld [vmem:[%s3273_s20 + $0x28] sm:$0xff]  ;;  %v3333_v55 = vrot.slane %v3329_v53, %v1609_v52  ;;  %v3338_v58 = vrot.slane %v3329_v53, %v1781_v54  ;;  %v3344_v62 = vadd.s32 32, %v3323_v51 }
  0x14   : > { %v394_v9 = vpack.c.bf16 %v364_v6, %v363_v4  ;;  %v395_v10 = vpack.c.bf16 %v366_v8, %v365_v7  ;;  %v367_v11 = vld [vmem:[%s3273_s20 + $0x30] sm:$0xff]  ;;  %v368_v12 = vld [vmem:[%s3273_s20 + $0x38] sm:$0xff]  ;;  %v369_v13 = vld [vmem:[%s3273_s20 + $0x40] sm:$0xff]  ;;  %v3347_v63 = vadd.s32 48, %v3323_v51  ;;  %v3350_v0 = vadd.s32 64, %v3323_v51 }
  0x15   : > { %3079 = vmatprep.mubr.msk.bf16.mxu0 %vm410_vm1, %v393_v5  ;;  %v370_v14 = vld [vmem:[%s3273_s20 + $0x48] sm:$0xff]  ;;  %v396_v15 = vpack.c.bf16 %v368_v12, %v367_v11  ;;  %v371_v17 = vld [vmem:[%s3273_s20 + $0x50] sm:$0xff]  ;;  %v372_v18 = vld [vmem:[%s3273_s20 + $0x58] sm:$0xff]  ;;  %v3353_v1 = vadd.s32 80, %v3323_v51  ;;  %v3356_v2 = vadd.s32 96, %v3323_v51  ;;  %v3359_v3 = vadd.s32 112, %v3323_v51 }
  0x16   : > { %3080 = vmatmul.mubr.msk.bf16.vlgmr.msra.gmra.mrb[0].mxu0 %vm410_vm1, %v394_v9  ;;  %v397_v16 = vpack.c.bf16 %v370_v14, %v369_v13  ;;  %v373_v19 = vld [vmem:[%s3273_s20 + $0x60] sm:$0xff]  ;;  %v374_v20 = vld [vmem:[%s3273_s20 + $0x68] sm:$0xff]  ;;  %v398_v21 = vpack.c.bf16 %v372_v18, %v371_v17  ;;  %v375_v23 = vld [vmem:[%s3273_s20 + $0x70] sm:$0xff]  ;;  %v3362_v4 = vadd.s32 128, %v3323_v51  ;;  %v3365_v5 = vadd.s32 8, %v3323_v51 }
  0x17   : > { %3083 = vmatprep.mubr.msk.bf16.mxu0 %vm410_vm1, %v395_v10  ;;  %v399_v22 = vpack.c.bf16 %v374_v20, %v373_v19  ;;  %v376_v24 = vld [vmem:[%s3273_s20 + $0x78] sm:$0xff]  ;;  %v377_v25 = vld [vmem:[%s3273_s20 + $0x80] sm:$0xff]  ;;  %v378_v26 = vld [vmem:[%s3273_s20 + $0x88] sm:$0xff]  ;;  %v3368_v6 = vrot.slane %v3329_v53, %v1745_v56  ;;  %v3371_v7 = vrot.slane %v3329_v53, %v1953_v57  ;;  %v3374_v8 = vadd.s32 144, %v3323_v51 }
  0x18   : > { %v400_v27 = vpack.c.bf16 %v376_v24, %v375_v23  ;;  %v401_v28 = vpack.c.bf16 %v378_v26, %v377_v25  ;;  %v379_v29 = vld [vmem:[%s3273_s20 + $0x90] sm:$0xff]  ;;  %v380_v30 = vld [vmem:[%s3273_s20 + $0x98] sm:$0xff]  ;;  %v381_v31 = vld [vmem:[%s3273_s20 + $0xa0] sm:$0xff]  ;;  %5067 = vst [vmem:[#allocation2_spill] sm:$0xff] %v3365_v5  ;;  %v3377_v9 = vadd.s32 16, %v3323_v51  ;;  %v3385_v11 = vrot.slane %v3329_v53, %v1849_v59 }
  0x19   : > { %v382_v32 = vld [vmem:[%s3273_s20 + $0xa8] sm:$0xff]  ;;  %v402_v33 = vpack.c.bf16 %v380_v30, %v379_v29  ;;  %v383_v35 = vld [vmem:[%s3273_s20 + $0xb0] sm:$0xff]  ;;  %v384_v36 = vld [vmem:[%s3273_s20 + $0xb8] sm:$0xff]  ;;  %v3388_v12 = vrot.slane %v3329_v53, %v1573_v60  ;;  %v3391_v13 = vrot.slane %v3329_v53, %v1917_v61  ;;  %v3394_v14 = vadd.s32 24, %v3323_v51 }
  0x1a   : > { %v403_v34 = vpack.c.bf16 %v382_v32, %v381_v31  ;;  %v385_v37 = vld [vmem:[%s3273_s20 + $0xc0] sm:$0xff]  ;;  %v386_v38 = vld [vmem:[%s3273_s20 + $0xc8] sm:$0xff]  ;;  %v404_v39 = vpack.c.bf16 %v384_v36, %v383_v35  ;;  %v387_v41 = vld [vmem:[%s3273_s20 + $0xd0] sm:$0xff]  ;;  %5068 = vst [vmem:[#allocation3_spill] sm:$0xff] %v3385_v11  ;;  %v819_v29 = vand.u32 15, %v3377_v9  ;;  %v3417_v32 = vadd.s32 176, %v3323_v51 }
  0x1b   : > { %v405_v40 = vpack.c.bf16 %v386_v38, %v385_v37  ;;  %v388_v42 = vld [vmem:[%s3273_s20 + $0xd8] sm:$0xff]  ;;  %v389_v43 = vld [vmem:[%s3273_s20 + $0xe0] sm:$0xff]  ;;  %v390_v44 = vld [vmem:[%s3273_s20 + $0xe8] sm:$0xff]  ;;  %5069 = vst [vmem:[#allocation4_spill] sm:$0xff] %v3394_v14  ;;  %v3426_v38 = vadd.s32 208, %v3323_v51  ;;  %vm1249_vm3 = vcmp.lt.s32.totalorder %v3323_v51, 1 }
  0x1c   : > { %v406_v45 = vpack.c.bf16 %v388_v42, %v387_v41  ;;  %v407_v46 = vpack.c.bf16 %v390_v44, %v389_v43  ;;  %v391_v47 = vld [vmem:[%s3273_s20 + $0xf0] sm:$0xff]  ;;  %v392_v48 = vld [vmem:[%s3273_s20 + $0xf8] sm:$0xff]  ;;  %v3382_v10 = vld [vmem:[%s5025_s2] ss:$0 sm:$0xff]  ;;  %v3440_v44 = vadd.s32 248, %v3323_v51  ;;  %vm1442_vm4 = vcmp.lt.s32.totalorder %v3323_v51, 7 }
  0x1d   : > { %v408_v49 = vpack.c.bf16 %v392_v48, %v391_v47  ;;  %v3158_v41 = vld [vmem:[%s5030_s7 + $0x8] ss:$0 sps:$4 sm:$0xff]   ;;  %v1677_v48 = vsub.s32 2, %v3323_v51  ;;  %vm3462_vm5 = vcmp.eq.s32.totalorder %v819_v29, 0 }
  0x1e   : > { %3084 = vmatmul.mubr.msk.bf16.gmra.mrb[4].mxu0 %vm410_vm1, %v396_v15  ;;  %v3399_v15 = vld [vmem:[%s5026_s3] ss:$0 sm:$0xff]  ;;  %v2628_v60 = vsel %vm2626_vm2, %v3158_v41, 0 }
  0x1f   : > { %3087 = vmatprep.mubr.msk.bf16.mxu0 %vm410_vm1, %v397_v16  ;;  %v833_v16 = vand.u32 15, %v3344_v62 }
  0x21   : > { %vm3515_vm6 = vcmp.eq.s32.totalorder %v833_v16, 0 }
  0x26   : > { %3088 = vmatmul.mubr.msk.bf16.gmra.mrb[8].mxu0 %vm410_vm1, %v398_v21 }
  0x27   : > { %3091 = vmatprep.mubr.msk.bf16.mxu0 %vm410_vm1, %v399_v22 }
  0x2e   : > { %3092 = vmatmul.mubr.msk.bf16.gmra.mrb[12].mxu0 %vm410_vm1, %v400_v27 }
  0x2f   : > { %3095 = vmatprep.mubr.msk.bf16.mxu0 %vm410_vm1, %v401_v28  ;;  %v3412_v28 = vadd.s32 160, %v3323_v51 }
  0x36   : > { %3096 = vmatmul.mubr.msk.bf16.gmra.mrb[16].mxu0 %vm410_vm1, %v402_v33  ;;  %v3420_v33 = vadd.s32 192, %v3323_v51 }
  0x37   : > { %3099 = vmatprep.mubr.msk.bf16.mxu0 %vm410_vm1, %v403_v34 }
  0x3e   : > { %3100 = vmatmul.mubr.msk.bf16.gmra.mrb[20].mxu0 %vm410_vm1, %v404_v39  ;;  %v3429_v39 = vadd.s32 224, %v3323_v51 }
  0x3f   : > { %3103 = vmatprep.mubr.msk.bf16.mxu0 %vm410_vm1, %v405_v40  ;;  %v3157_v40 = vld [vmem:[%s5030_s7] sm:$0xff]  }
  0x40   : > { %3111 = vmatprep.subr.bf16.mxu1 %v3157_v40 }
  0x41   : > { %3112 = vmatpush3.bf16.msra.mxu1 %v3157_v40  ;;  %v3467_v40 = vrot.slane %v3329_v53, %v1677_v48 }
  0x42   : > { %3148 = vmatprep.subr.msk.bf16.mxu1 %vm2626_vm2, %v3158_v41 }
  0x43   : > { %5072 = vst [vmem:[#allocation5_spill] sm:$0xff] %v3467_v40 }
  0x45   : > { %3114 = vmatpush3.bf16.msra.mxu1 %v2628_v60 }
  0x46   : > { %3104 = vmatmul.mubr.msk.bf16.gmra.mrb[24].mxu0 %vm410_vm1, %v406_v45 }
  0x47   : > { %3107 = vmatprep.mubr.msk.bf16.mxu0 %vm410_vm1, %v407_v46 }
  0x4e   : > { %3108 = vmatmul.mubr.msk.bf16.gmra.mrb[28].mxu0 %vm410_vm1, %v408_v49 }
  0xe9   : > { %v3081_v20 = vpop.f32.mrb[0].mxu0 }
  0xea   : > { %v633_v25 = vmul.f32 %v3081_v20, %v3382_v10  ;;  %v497_v26 = vpop.f32.mrb[1].mxu0 }
  0xeb   : > { %v631_v30 = vmul.f32 %v3382_v10, %v497_v26  ;;  %v3082_v31 = vpop.f32.mrb[2].mxu0 }
  0xec   : > { %v672_v35 = vadd.f32 %v3399_v15, %v633_v25  ;;  %v634_v36 = vmul.f32 %v3082_v31, %v3382_v10  ;;  %v500_v37 = vpop.f32.mrb[3].mxu0 }
  0xed   : > { %v670_v42 = vadd.f32 %v3399_v15, %v631_v30  ;;  %v632_v43 = vmul.f32 %v3382_v10, %v500_v37 }
  0xee   : > { %v704_v45 = vmax.f32 %v672_v35, 0.0  ;;  %v673_v46 = vadd.f32 %v3399_v15, %v634_v36 }
  0xef   : > { %v702_v49 = vmax.f32 %v670_v42, 0.0  ;;  %v671_v50 = vadd.f32 %v3399_v15, %v632_v43 }
  0xf0   : > { %v3450_v56 = vmin.f32 %v704_v45, 6.0  ;;  %v705_v57 = vmax.f32 %v673_v46, 0.0 }
  0xf1   : > { %v3455_v61 = vmin.f32 %v702_v49, 6.0  ;;  %v703_v9 = vmax.f32 %v671_v50, 0.0  ;;  %v3085_v20 = vpop.f32.mrb[4].mxu0 }
  0xf2   : > { %v1219_v30 = vrot.slane %v3450_v56, 7  ;;  %v5035_v31 = vrot.slane %v3450_v56, 1  ;;  %v513_v35 = vpop.f32.mrb[5].mxu0  ;;  %v3471_v41 = vmul.f32 %v3333_v55, %v3450_v56  ;;  %v3475_v42 = vmul.f32 %v3338_v58, %v3450_v56 }
  0xf3   : > { %v5034_v43 = vrot.slane %v3455_v61, 7  ;;  %v3086_v46 = vpop.f32.mrb[6].mxu0  ;;  %v3479_v29 = vmin.f32 %v705_v57, 6.0  ;;  %v3481_v49 = vmin.f32 %v703_v9, 6.0  ;;  %v637_v53 = vmul.f32 %v3085_v20, %v3382_v10 }
  0xf4   : > { %5073 = vst [vmem:[#allocation6_spill] sm:$0xff] %v3471_v41  ;;  %5074 = vst [vmem:[#allocation7_spill] sm:$0xff] %v3475_v42  ;;  %v635_v48 = vmul.f32 %v3382_v10, %v513_v35  ;;  %v516_v50 = vpop.f32.mrb[7].mxu0  ;;  %v3487_v34 = vmul.f32 %v3333_v55, %v3455_v61  ;;  %v3491_v24 = vmul.f32 %v3338_v58, %v3455_v61 }
  0xf5   : > { %v638_v36 = vmul.f32 %v3086_v46, %v3382_v10  ;;  %v636_v57 = vmul.f32 %v3382_v10, %v516_v50  ;;  %v1220_v60 = vrot.slane %v3479_v29, 7  ;;  %v5036_v9 = vrot.slane %v3479_v29, 1 }
  0xf6   : > { %5075 = vst [vmem:[#allocation8_spill] sm:$0xff] %v3487_v34  ;;  %5076 = vst [vmem:[#allocation9_spill] sm:$0xff] %v3491_v24  ;;  %v3499_v20 = vmul.f32 %v3333_v55, %v3479_v29  ;;  %v3503_v35 = vmul.f32 %v3371_v7, %v3450_v56  ;;  %v3507_v26 = vmul.f32 %v3338_v58, %v3479_v29  ;;  %v1218_v46 = vrot.slane %v3481_v49, 7 }
  0xf7   : > { %v1612_v25 = vmul.f32 %v3333_v55, %v3481_v49  ;;  %v676_v45 = vadd.f32 %v3399_v15, %v637_v53  ;;  %v674_v54 = vadd.f32 %v3399_v15, %v635_v48  ;;  %v677_v52 = vadd.f32 %v3399_v15, %v638_v36 }
  0xf8   : > { %5077 = vst [vmem:[#allocation10_spill] sm:$0xff] %v3499_v20  ;;  %5078 = vst [vmem:[#allocation11_spill] sm:$0xff] %v3503_v35  ;;  %v675_v47 = vadd.f32 %v3399_v15, %v636_v57  ;;  %v1279_v50 = vsel %vm1249_vm3, %v1218_v46, %v1219_v30  ;;  %v3529_v62 = vsel %vm1249_vm3, %v5034_v43, %v1218_v46 }
  0xf9   : > { %5079 = vst [vmem:[#allocation12_spill] sm:$0xff] %v3507_v26  ;;  %5082 = vst [vmem:[#allocation13_spill] sm:$0xff] %v3529_v62  ;;  %v3089_v16 = vpop.f32.mrb[8].mxu0  ;;  %v3533_v27 = vsel %vm1249_vm3, %v1219_v30, %v1220_v60  ;;  %v3541_v36 = vsel %vm1442_vm4, %v5035_v31, %v5036_v9  ;;  %v1576_v53 = vmul.f32 %v3388_v12, %v3529_v62  ;;  %v708_v48 = vmax.f32 %v676_v45, 0.0 }
  0xfa   : > { %5083 = vst [vmem:[#allocation14_spill] sm:$0xff] %v3533_v27  ;;  %5084 = vst [vmem:[#allocation15_spill] sm:$0xff] %v3541_v36  ;;  %v706_v57 = vmax.f32 %v674_v54, 0.0  ;;  %v709_v46 = vmax.f32 %v677_v52, 0.0  ;;  %v529_v43 = vpop.f32.mrb[9].mxu0  ;;  %v3547_v23 = vmul.f32 %v3338_v58, %v3481_v49  ;;  %v707_v30 = vmax.f32 %v675_v47, 0.0 }
  0xfb   : > { %v641_v22 = vmul.f32 %v3089_v16, %v3382_v10  ;;  %v639_v21 = vmul.f32 %v3382_v10, %v529_v43  ;;  %v3090_v19 = vpop.f32.mrb[10].mxu0  ;;  %v3551_v18 = vadd.f32 %v1612_v25, %v1576_v53  ;;  %v740_v31 = vmin.f32 %v708_v48, 6.0 }
  0xfc   : > { %5085 = vst [vmem:[#allocation16_spill] sm:$0xff] %v3547_v23  ;;  %v3553_v9 = vmin.f32 %v706_v57, 6.0  ;;  %v3555_v17 = vmin.f32 %v709_v46, 6.0  ;;  %v532_v54 = vpop.f32.mrb[11].mxu0  ;;  %v739_v52 = vmin.f32 %v707_v30, 6.0  ;;  %v3565_v47 = vsel %vm3462_vm5, 0.0, %v1279_v50 }
  0xfd   : > { %5086 = vst [vmem:[#allocation17_spill] sm:$0xff] %v3551_v18  ;;  %v3558_v45 = vadd.f32 %v3399_v15, %v641_v22  ;;  %v3561_v20 = vadd.f32 %v3399_v15, %v639_v21  ;;  %5087 = vst [vmem:[#allocation18_spill] sm:$0xff] %v3565_v47  ;;  %v1223_v43 = vrot.slane %v740_v31, 7  ;;  %v1416_v25 = vrot.slane %v740_v31, 1 }
  0xfe   : > { %v3568_v16 = vmul.f32 %v3333_v55, %v740_v31  ;;  %v642_v53 = vmul.f32 %v3090_v19, %v3382_v10  ;;  %v3572_v48 = vmul.f32 %v3338_v58, %v740_v31  ;;  %v3575_v22 = vmul.f32 %v3371_v7, %v740_v31 }
  0xff   : > { %v1221_v21 = vrot.slane %v3553_v9, 7  ;;  %v1615_v37 = vmul.f32 %v3333_v55, %v3553_v9  ;;  %v1787_v50 = vmul.f32 %v3338_v58, %v3553_v9  ;;  %v1959_v57 = vmul.f32 %v3371_v7, %v3553_v9 }
 0x100   : > { %5088 = vst [vmem:[#allocation19_spill] sm:$0xff] %v3568_v16  ;;  %5089 = vst [vmem:[#allocation20_spill] sm:$0xff] %v3572_v48  ;;  %v5091_v30 = vand.u32 15, %v3347_v63  ;;  %v1618_v48 = vmul.f32 %v3333_v55, %v3555_v17  ;;  %v1962_v46 = vmul.f32 %v3371_v7, %v3555_v17  ;;  %v1222_v42 = vrot.slane %v739_v52, 7 }
 0x101   : > { %5090 = vst [vmem:[#allocation21_spill] sm:$0xff] %v3575_v22  ;;  %v1277_v16 = vsel %vm1249_vm3, %v1220_v60, %v1221_v21  ;;  %v1790_v22 = vmul.f32 %v3338_v58, %v3555_v17  ;;  %v3093_v41 = vpop.f32.mrb[12].mxu0  ;;  %v5095_v60 = vrot.slane %v3555_v17, 1  ;;  %v5045_v47 = vrot.slane %v3553_v9, 1 }
 0x102   : > { %vm3588_vm7 = vcmp.eq.s32.totalorder %v5091_v30, 0  ;;  %v1350_v63 = vsel %vm3515_vm6, 0.0, %v1277_v16  ;;  %v5094_v30 = vrot.slane %v3555_v17, 7  ;;  %v545_v35 = vpop.f32.mrb[13].mxu0  ;;  %v1275_v36 = vsel %vm1249_vm3, %v1222_v42, %v1223_v43 }
 0x103   : > { %v3610_v26 = vsel %vm1442_vm4, %v1416_v25, %v5095_v60  ;;  %v1579_v23 = vmul.f32 %v3388_v12, %v1350_v63  ;;  %v1751_v24 = vmul.f32 %v3368_v6, %v1350_v63  ;;  %v1923_v59 = vmul.f32 %v3391_v13, %v1350_v63  ;;  %v3094_v62 = vpop.f32.mrb[14].mxu0 }
 0x104   : > { %v1274_v19 = vsel %vm1249_vm3, %v1223_v43, %v5094_v30  ;;  %5096 = vst [vmem:[#allocation22_spill] sm:$0xff] %v3610_v26  ;;  %v1276_v60 = vsel %vm1249_vm3, %v1221_v21, %v1222_v42  ;;  %v548_v26 = vpop.f32.mrb[15].mxu0  ;;  %v1415_v14 = vrot.slane %v739_v52, 1  ;;  %v5103_v43 = vand.u32 15, %v3350_v0 }
 0x105   : > { %v1582_v16 = vmul.f32 %v3388_v12, %v1274_v19  ;;  %v1754_v18 = vmul.f32 %v3368_v6, %v1274_v19  ;;  %v1926_v30 = vmul.f32 %v3391_v13, %v1274_v19  ;;  %v3622_v40 = vadd.f32 %v1615_v37, %v1579_v23 }
 0x106   : > { %v3624_v34 = vadd.f32 %v1787_v50, %v1751_v24  ;;  %v3626_v27 = vadd.f32 %v1959_v57, %v1923_v59  ;;  %vm3637_vm8 = vcmp.eq.s32.totalorder %v5103_v43, 0  ;;  %v1580_v23 = vmul.f32 %v3388_v12, %v1276_v60 }
 0x107   : > { %5097 = vst [vmem:[#allocation23_spill] sm:$0xff] %v3622_v40  ;;  %v3628_v63 = vadd.f32 %v1618_v48, %v1582_v16  ;;  %v3631_v11 = vadd.f32 %v1790_v22, %v1754_v18  ;;  %v3633_v19 = vadd.f32 %v1962_v46, %v1926_v30  ;;  %v1616_v24 = vmul.f32 %v3333_v55, %v739_v52 }
 0x108   : > { %5098 = vst [vmem:[#allocation24_spill] sm:$0xff] %v3624_v34  ;;  %5099 = vst [vmem:[#allocation25_spill] sm:$0xff] %v3626_v27  ;;  %v1752_v48 = vmul.f32 %v3368_v6, %v1276_v60  ;;  %v1788_v21 = vmul.f32 %v3338_v58, %v739_v52  ;;  %v3647_v18 = vsel %vm1442_vm4, %v1415_v14, %v1416_v25  ;;  %v712_v46 = vmax.f32 %v3558_v45, 0.0 }
 0x109   : > { %5100 = vst [vmem:[#allocation26_spill] sm:$0xff] %v3628_v63  ;;  %5101 = vst [vmem:[#allocation27_spill] sm:$0xff] %v3631_v11  ;;  %v3653_v0 = vsel %vm1442_vm4, %v5045_v47, %v1415_v14  ;;  %v1924_v22 = vmul.f32 %v3391_v13, %v1276_v60  ;;  %v1960_v37 = vmul.f32 %v3371_v7, %v739_v52  ;;  %v710_v59 = vmax.f32 %v3561_v20, 0.0  ;;  %v3663_v25 = vpop.f32.mrb[16].mxu0 }
 0x10a   : > { %5102 = vst [vmem:[#allocation28_spill] sm:$0xff] %v3633_v19  ;;  %5106 = vst [vmem:[#allocation29_spill] sm:$0xff] %v3647_v18  ;;  %v3657_v50 = vadd.f32 %v1616_v24, %v1580_v23  ;;  %v3659_v57 = vadd.f32 %v1788_v21, %v1752_v48  ;;  %v681_v30 = vadd.f32 %v3399_v15, %v642_v53  ;;  %v3670_v43 = vpop.f32.mrb[17].mxu0  ;;  %v3674_v52 = vsel %vm3588_vm7, 0.0, %v1275_v36 }
 0x10b   : > { %5107 = vst [vmem:[#allocation30_spill] sm:$0xff] %v3653_v0  ;;  %v3665_v16 = vadd.f32 %v1960_v37, %v1924_v22  ;;  %v640_v14 = vmul.f32 %v3382_v10, %v532_v54  ;;  %v645_v60 = vmul.f32 %v3093_v41, %v3382_v10  ;;  %5111 = vst [vmem:[#allocation34_spill] sm:$0xff] %v3674_v52  ;;  %v744_v23 = vmin.f32 %v712_v46, 6.0  ;;  %v3677_v24 = vpop.f32.mrb[18].mxu0 }
 0x10c   : > { %5108 = vst [vmem:[#allocation31_spill] sm:$0xff] %v3657_v50  ;;  %5109 = vst [vmem:[#allocation32_spill] sm:$0xff] %v3659_v57  ;;  %v742_v45 = vmin.f32 %v710_v59, 6.0  ;;  %v643_v20 = vmul.f32 %v3382_v10, %v545_v35  ;;  %v713_v48 = vmax.f32 %v681_v30, 0.0  ;;  %v646_v54 = vmul.f32 %v3094_v62, %v3382_v10  ;;  %v3682_v41 = vpop.f32.mrb[19].mxu0 }
 0x10d   : > { %5110 = vst [vmem:[#allocation33_spill] sm:$0xff] %v3665_v16  ;;  %v679_v21 = vadd.f32 %v3399_v15, %v640_v14  ;;  %v684_v53 = vadd.f32 %v3399_v15, %v645_v60  ;;  %v1227_v22 = vrot.slane %v744_v23, 7  ;;  %v1420_v37 = vrot.slane %v744_v23, 1 }
 0x10e   : > { %v3685_v36 = vmul.f32 %v3333_v55, %v744_v23  ;;  %v644_v31 = vmul.f32 %v3382_v10, %v548_v26  ;;  %v3689_v35 = vmul.f32 %v3338_v58, %v744_v23  ;;  %v1225_v46 = vrot.slane %v742_v45, 7 }
 0x10f   : > { %v1418_v59 = vrot.slane %v742_v45, 1  ;;  %v1619_v30 = vmul.f32 %v3333_v55, %v742_v45  ;;  %v1791_v14 = vmul.f32 %v3338_v58, %v742_v45  ;;  %v1963_v62 = vmul.f32 %v3371_v7, %v742_v45 }
 0x110   : > { %5112 = vst [vmem:[#allocation35_spill] sm:$0xff] %v3685_v36  ;;  %5113 = vst [vmem:[#allocation36_spill] sm:$0xff] %v3689_v35  ;;  %v3694_v60 = vmin.f32 %v713_v48, 6.0  ;;  %v711_v47 = vmax.f32 %v679_v21, 0.0  ;;  %v5114_v63 = vrot.slane %v3555_v17, 7  ;;  %v5115_v26 = vrot.slane %v3555_v17, 1 }
 0x111   : > { %v5117_v11 = vand.u32 15, %v3353_v1  ;;  %v716_v45 = vmax.f32 %v684_v53, 0.0  ;;  %v682_v48 = vadd.f32 %v3399_v15, %v643_v20  ;;  %v3719_v40 = vpop.f32.mrb[20].mxu0 }
 0x112   : > { %v1273_v36 = vsel %vm1249_vm3, %v5114_v63, %v1225_v46  ;;  %v3704_v35 = vsel %vm1442_vm4, %v5115_v26, %v1418_v59  ;;  %v5047_v63 = vrot.slane %v3694_v60, 7  ;;  %v5048_v17 = vrot.slane %v3694_v60, 1  ;;  %v3726_v42 = vpop.f32.mrb[21].mxu0 }
 0x113   : > { %5116 = vst [vmem:[#allocation37_spill] sm:$0xff] %v3704_v35  ;;  %vm3708_vm9 = vcmp.eq.s32.totalorder %v5117_v11, 0  ;;  %v1354_v21 = vsel %vm3637_vm8, 0.0, %v1273_v36  ;;  %v1622_v26 = vmul.f32 %v3333_v55, %v3694_v60  ;;  %v1794_v20 = vmul.f32 %v3338_v58, %v3694_v60  ;;  %v3740_v57 = vpop.f32.mrb[22].mxu0 }
 0x114   : > { %v1583_v1 = vmul.f32 %v3388_v12, %v1354_v21  ;;  %v1755_v11 = vmul.f32 %v3368_v6, %v1354_v21  ;;  %v1927_v53 = vmul.f32 %v3391_v13, %v1354_v21  ;;  %v1270_v36 = vsel %vm1249_vm3, %v1227_v22, %v5047_v63  ;;  %v3749_v18 = vpop.f32.mrb[23].mxu0 }
 0x115   : > { %v3736_v19 = vsel %vm1442_vm4, %v1420_v37, %v5048_v17  ;;  %v1966_v52 = vmul.f32 %v3371_v7, %v3694_v60  ;;  %v743_v21 = vmin.f32 %v711_v47, 6.0  ;;  %v1586_v63 = vmul.f32 %v3388_v12, %v1270_v36 }
 0x116   : > { %5120 = vst [vmem:[#allocation38_spill] sm:$0xff] %v3736_v19  ;;  %v3742_v34 = vadd.f32 %v1619_v30, %v1583_v1  ;;  %v3744_v16 = vadd.f32 %v1791_v14, %v1755_v11  ;;  %v3746_v35 = vadd.f32 %v1963_v62, %v1927_v53  ;;  %v1758_v27 = vmul.f32 %v3368_v6, %v1270_v36 }
 0x117   : > { %v1930_v17 = vmul.f32 %v3391_v13, %v1270_v36  ;;  %v1226_v19 = vrot.slane %v743_v21, 7  ;;  %v1419_v0 = vrot.slane %v743_v21, 1  ;;  %v3754_v47 = vmul.f32 %v3371_v7, %v744_v23 }
 0x118   : > { %5121 = vst [vmem:[#allocation39_spill] sm:$0xff] %v3742_v34  ;;  %5122 = vst [vmem:[#allocation40_spill] sm:$0xff] %v3744_v16  ;;  %v3756_v5 = vadd.f32 %v1622_v26, %v1586_v63  ;;  %v1620_v30 = vmul.f32 %v3333_v55, %v743_v21  ;;  %v1792_v14 = vmul.f32 %v3338_v58, %v743_v21  ;;  %v5126_v62 = vand.u32 15, %v3356_v2 }
 0x119   : > { %5123 = vst [vmem:[#allocation41_spill] sm:$0xff] %v3746_v35  ;;  %5124 = vst [vmem:[#allocation42_spill] sm:$0xff] %v3754_v47  ;;  %v3766_v11 = vadd.f32 %v1794_v20, %v1758_v27  ;;  %v3768_v53 = vadd.f32 %v1966_v52, %v1930_v17  ;;  %v1271_v23 = vsel %vm1249_vm3, %v1226_v19, %v1227_v22  ;;  %v3786_v22 = vmin.f32 %v716_v45, 6.0 }
 0x11a   : > { %5125 = vst [vmem:[#allocation43_spill] sm:$0xff] %v3756_v5  ;;  %vm3762_vm10 = vcmp.eq.s32.totalorder %v5126_v62, 0  ;;  %v1272_v63 = vsel %vm1249_vm3, %v1225_v46, %v1226_v19  ;;  %v3776_v26 = vsel %vm1442_vm4, %v1419_v0, %v1420_v37  ;;  %v3780_v2 = vsel %vm1442_vm4, %v1418_v59, %v1419_v0  ;;  %v3788_v19 = vpop.f32.mrb[24].mxu0 }
 0x11b   : > { %5129 = vst [vmem:[#allocation44_spill] sm:$0xff] %v3766_v11  ;;  %5130 = vst [vmem:[#allocation45_spill] sm:$0xff] %v3768_v53  ;;  %v1584_v36 = vmul.f32 %v3388_v12, %v1272_v63  ;;  %v1964_v27 = vmul.f32 %v3371_v7, %v743_v21  ;;  %v1756_v52 = vmul.f32 %v3368_v6, %v1272_v63  ;;  %v714_v20 = vmax.f32 %v682_v48, 0.0  ;;  %v3796_v62 = vpop.f32.mrb[25].mxu0 }
 0x11c   : > { %5131 = vst [vmem:[#allocation46_spill] sm:$0xff] %v3776_v26  ;;  %5132 = vst [vmem:[#allocation47_spill] sm:$0xff] %v3780_v2  ;;  %v1928_v17 = vmul.f32 %v3391_v13, %v1272_v63  ;;  %v685_v37 = vadd.f32 %v3399_v15, %v646_v54  ;;  %v683_v0 = vadd.f32 %v3399_v15, %v644_v31  ;;  %v3800_v21 = vsel %vm3708_vm9, 0.0, %v1271_v23  ;;  %v3807_v63 = vpop.f32.mrb[26].mxu0 }
 0x11d   : > { %v3790_v46 = vadd.f32 %v1620_v30, %v1584_v36  ;;  %v649_v59 = vmul.f32 %v3663_v25, %v3382_v10  ;;  %5134 = vst [vmem:[#allocation49_spill] sm:$0xff] %v3800_v21  ;;  %v3802_v45 = vadd.f32 %v1792_v14, %v1756_v52  ;;  %v1231_v30 = vrot.slane %v3786_v22, 7  ;;  %v3818_v23 = vpop.f32.mrb[27].mxu0 }
 0x11e   : > { %v3804_v48 = vadd.f32 %v1964_v27, %v1928_v17  ;;  %v1424_v54 = vrot.slane %v3786_v22, 1  ;;  %v3812_v31 = vmul.f32 %v3333_v55, %v3786_v22  ;;  %v3816_v25 = vmul.f32 %v3338_v58, %v3786_v22 }
 0x11f   : > { %5133 = vst [vmem:[#allocation48_spill] sm:$0xff] %v3790_v46  ;;  %5135 = vst [vmem:[#allocation50_spill] sm:$0xff] %v3802_v45  ;;  %v746_v50 = vmin.f32 %v714_v20, 6.0  ;;  %v717_v14 = vmax.f32 %v685_v37, 0.0  ;;  %v715_v36 = vmax.f32 %v683_v0, 0.0  ;;  %v688_v27 = vadd.f32 %v3399_v15, %v649_v59 }
 0x120   : > { %5136 = vst [vmem:[#allocation51_spill] sm:$0xff] %v3804_v48  ;;  %5137 = vst [vmem:[#allocation52_spill] sm:$0xff] %v3812_v31  ;;  %v647_v52 = vmul.f32 %v3382_v10, %v3670_v43  ;;  %v3825_v17 = vmul.f32 %v3371_v7, %v3786_v22  ;;  %v5140_v0 = vrot.slane %v3694_v60, 7  ;;  %v5141_v59 = vrot.slane %v3694_v60, 1 }
 0x121   : > { %5138 = vst [vmem:[#allocation53_spill] sm:$0xff] %v3816_v25  ;;  %v1229_v5 = vrot.slane %v746_v50, 7  ;;  %v1422_v31 = vrot.slane %v746_v50, 1  ;;  %v1623_v11 = vmul.f32 %v3333_v55, %v746_v50  ;;  %v1795_v25 = vmul.f32 %v3338_v58, %v746_v50  ;;  %v3855_v53 = vpop.f32.mrb[28].mxu0 }
 0x122   : > { %5139 = vst [vmem:[#allocation54_spill] sm:$0xff] %v3825_v17  ;;  %v1967_v20 = vmul.f32 %v3371_v7, %v746_v50  ;;  %v3830_v46 = vmin.f32 %v717_v14, 6.0  ;;  %v747_v37 = vmin.f32 %v715_v36, 6.0  ;;  %v5143_v17 = vand.u32 15, %v3359_v3  ;;  %v3862_v1 = vpop.f32.mrb[29].mxu0 }
 0x123   : > { %v1269_v43 = vsel %vm1249_vm3, %v5140_v0, %v1229_v5  ;;  %v3840_v22 = vsel %vm1442_vm4, %v5141_v59, %v1422_v31  ;;  %v720_v50 = vmax.f32 %v688_v27, 0.0  ;;  %v686_v14 = vadd.f32 %v3399_v15, %v647_v52  ;;  %v3876_v21 = vpop.f32.mrb[30].mxu0 }
 0x124   : > { %5142 = vst [vmem:[#allocation55_spill] sm:$0xff] %v3840_v22  ;;  %vm3844_vm11 = vcmp.eq.s32.totalorder %v5143_v17, 0  ;;  %v1358_v36 = vsel %vm3762_vm10, 0.0, %v1269_v43  ;;  %v5053_v0 = vrot.slane %v3830_v46, 7  ;;  %v5055_v60 = vrot.slane %v3830_v46, 1  ;;  %v3885_v35 = vpop.f32.mrb[31].mxu0 }
 0x125   : > { %v1626_v59 = vmul.f32 %v3333_v55, %v3830_v46  ;;  %v1587_v3 = vmul.f32 %v3388_v12, %v1358_v36  ;;  %v1759_v17 = vmul.f32 %v3368_v6, %v1358_v36  ;;  %v1931_v27 = vmul.f32 %v3391_v13, %v1358_v36 }
 0x126   : > { %v1798_v52 = vmul.f32 %v3338_v58, %v3830_v46  ;;  %v1266_v43 = vsel %vm1249_vm3, %v1231_v30, %v5053_v0  ;;  %v3872_v47 = vsel %vm1442_vm4, %v1424_v54, %v5055_v60  ;;  %v1970_v45 = vmul.f32 %v3371_v7, %v3830_v46 }
 0x127   : > { %5146 = vst [vmem:[#allocation56_spill] sm:$0xff] %v3872_v47  ;;  %v1230_v36 = vrot.slane %v747_v37, 7  ;;  %v3878_v16 = vadd.f32 %v1623_v11, %v1587_v3  ;;  %v3880_v22 = vadd.f32 %v1795_v25, %v1759_v17  ;;  %v3882_v48 = vadd.f32 %v1967_v20, %v1931_v27 }
 0x128   : > { %v1590_v0 = vmul.f32 %v3388_v12, %v1266_v43  ;;  %v1762_v2 = vmul.f32 %v3368_v6, %v1266_v43  ;;  %v1934_v60 = vmul.f32 %v3391_v13, %v1266_v43  ;;  %v1423_v25 = vrot.slane %v747_v37, 1 }
 0x129   : > { %5147 = vst [vmem:[#allocation57_spill] sm:$0xff] %v3878_v16  ;;  %5148 = vst [vmem:[#allocation58_spill] sm:$0xff] %v3880_v22  ;;  %v1267_v47 = vsel %vm1249_vm3, %v1230_v36, %v1231_v30  ;;  %v1268_v26 = vsel %vm1249_vm3, %v1229_v5, %v1230_v36  ;;  %v5151_v3 = vand.u32 15, %v3362_v4  ;;  %v650_v27 = vmul.f32 %v3677_v24, %v3382_v10 }
 0x12a   : > { %5149 = vst [vmem:[#allocation59_spill] sm:$0xff] %v3882_v48  ;;  %v3893_v11 = vadd.f32 %v1626_v59, %v1590_v0  ;;  %v1588_v20 = vmul.f32 %v3388_v12, %v1268_v26  ;;  %v3904_v43 = vadd.f32 %v1798_v52, %v1762_v2  ;;  %v3906_v30 = vadd.f32 %v1970_v45, %v1934_v60 }
 0x12b   : > { %vm3898_vm12 = vcmp.eq.s32.totalorder %v5151_v3, 0  ;;  %v1624_v5 = vmul.f32 %v3333_v55, %v747_v37  ;;  %v1760_v0 = vmul.f32 %v3368_v6, %v1268_v26  ;;  %v3912_v59 = vsel %vm1442_vm4, %v1423_v25, %v1424_v54 }
 0x12c   : > { %5150 = vst [vmem:[#allocation60_spill] sm:$0xff] %v3893_v11  ;;  %5154 = vst [vmem:[#allocation61_spill] sm:$0xff] %v3904_v43  ;;  %v3916_v4 = vsel %vm1442_vm4, %v1422_v31, %v1423_v25  ;;  %v1796_v36 = vmul.f32 %v3338_v58, %v747_v37  ;;  %v1932_v24 = vmul.f32 %v3391_v13, %v1268_v26  ;;  %v752_v60 = vmin.f32 %v720_v50, 6.0 }
 0x12d   : > { %5155 = vst [vmem:[#allocation62_spill] sm:$0xff] %v3906_v30  ;;  %v3920_v2 = vadd.f32 %v1624_v5, %v1588_v20  ;;  %v1968_v45 = vmul.f32 %v3371_v7, %v747_v37  ;;  %v718_v52 = vmax.f32 %v686_v14, 0.0  ;;  %v689_v11 = vadd.f32 %v3399_v15, %v650_v27 }
 0x12e   : > { %v3923_v3 = vadd.f32 %v1796_v36, %v1760_v0  ;;  %v648_v54 = vmul.f32 %v3382_v10, %v3682_v41  ;;  %v653_v31 = vmul.f32 %v3719_v40, %v3382_v10  ;;  %v3932_v25 = vsel %vm3844_vm11, 0.0, %v1267_v47 }
 0x12f   : > { %5156 = vst [vmem:[#allocation63_spill] sm:$0xff] %v3920_v2  ;;  %5158 = vst [vmem:[#allocation65_spill] sm:$0xff] %v3932_v25  ;;  %v3934_v26 = vadd.f32 %v1968_v45, %v1932_v24  ;;  %v1235_v20 = vrot.slane %v752_v60, 7  ;;  %v1428_v37 = vrot.slane %v752_v60, 1  ;;  %v3937_v50 = vmul.f32 %v3333_v55, %v752_v60 }
 0x130   : > { %5157 = vst [vmem:[#allocation64_spill] sm:$0xff] %v3923_v3  ;;  %v3940_v14 = vmul.f32 %v3338_v58, %v752_v60  ;;  %v750_v27 = vmin.f32 %v718_v52, 6.0  ;;  %v721_v5 = vmax.f32 %v689_v11, 0.0  ;;  %v3943_v41 = vmul.f32 %v3371_v7, %v752_v60 }
 0x131   : > { %5159 = vst [vmem:[#allocation66_spill] sm:$0xff] %v3934_v26  ;;  %5160 = vst [vmem:[#allocation67_spill] sm:$0xff] %v3937_v50  ;;  %v687_v40 = vadd.f32 %v3399_v15, %v648_v54  ;;  %v692_v34 = vadd.f32 %v3399_v15, %v653_v31  ;;  %v651_v47 = vmul.f32 %v3382_v10, %v3726_v42  ;;  %v5163_v54 = vrot.slane %v3830_v46, 7 }
 0x132   : > { %5161 = vst [vmem:[#allocation68_spill] sm:$0xff] %v3940_v14  ;;  %5162 = vst [vmem:[#allocation69_spill] sm:$0xff] %v3943_v41  ;;  %v1233_v0 = vrot.slane %v750_v27, 7  ;;  %v1426_v36 = vrot.slane %v750_v27, 1  ;;  %v1627_v24 = vmul.f32 %v3333_v55, %v750_v27  ;;  %v654_v45 = vmul.f32 %v3740_v57, %v3382_v10 }
 0x133   : > { %v1799_v52 = vmul.f32 %v3338_v58, %v750_v27  ;;  %v1971_v11 = vmul.f32 %v3371_v7, %v750_v27  ;;  %v3954_v60 = vmin.f32 %v721_v5, 6.0  ;;  %v719_v50 = vmax.f32 %v687_v40, 0.0 }
 0x134   : > { %v1265_v31 = vsel %vm1249_vm3, %v5163_v54, %v1233_v0  ;;  %v5164_v42 = vrot.slane %v3830_v46, 1  ;;  %v5166_v57 = vand.u32 15, %v3374_v8  ;;  %v724_v27 = vmax.f32 %v692_v34, 0.0 }
 0x135   : > { %v690_v5 = vadd.f32 %v3399_v15, %v651_v47  ;;  %v1362_v40 = vsel %vm3898_vm12, 0.0, %v1265_v31  ;;  %v1236_v54 = vrot.slane %v3954_v60, 7  ;;  %v1429_v46 = vrot.slane %v3954_v60, 1 }
 0x136   : > { %v3964_v14 = vsel %vm1442_vm4, %v5164_v42, %v1426_v36  ;;  %vm3968_vm13 = vcmp.eq.s32.totalorder %v5166_v57, 0  ;;  %v1630_v42 = vmul.f32 %v3333_v55, %v3954_v60  ;;  %v1591_v43 = vmul.f32 %v3388_v12, %v1362_v40 }
 0x137   : > { %5165 = vst [vmem:[#allocation70_spill] sm:$0xff] %v3964_v14  ;;  %v1763_v8 = vmul.f32 %v3368_v6, %v1362_v40  ;;  %v1935_v57 = vmul.f32 %v3391_v13, %v1362_v40  ;;  %v1802_v34 = vmul.f32 %v3338_v58, %v3954_v60  ;;  %v1262_v17 = vsel %vm1249_vm3, %v1235_v20, %v1236_v54 }
 0x138   : > { %v3988_v47 = vsel %vm1442_vm4, %v1428_v37, %v1429_v46  ;;  %v1974_v31 = vmul.f32 %v3371_v7, %v3954_v60  ;;  %v751_v2 = vmin.f32 %v719_v50, 6.0  ;;  %v3992_v16 = vadd.f32 %v1627_v24, %v1591_v43 }
 0x139   : > { %5169 = vst [vmem:[#allocation71_spill] sm:$0xff] %v3988_v47  ;;  %v3994_v30 = vadd.f32 %v1799_v52, %v1763_v8  ;;  %v3996_v3 = vadd.f32 %v1971_v11, %v1935_v57  ;;  %v1594_v40 = vmul.f32 %v3388_v12, %v1262_v17  ;;  %v1766_v22 = vmul.f32 %v3368_v6, %v1262_v17 }
 0x13a   : > { %5170 = vst [vmem:[#allocation72_spill] sm:$0xff] %v3992_v16  ;;  %v1938_v25 = vmul.f32 %v3391_v13, %v1262_v17  ;;  %v1234_v14 = vrot.slane %v751_v2, 7  ;;  %v1427_v26 = vrot.slane %v751_v2, 1  ;;  %v1628_v47 = vmul.f32 %v3333_v55, %v751_v2 }
 0x13b   : > { %5171 = vst [vmem:[#allocation73_spill] sm:$0xff] %v3994_v30  ;;  %v4001_v48 = vadd.f32 %v1630_v42, %v1594_v40  ;;  %v1800_v50 = vmul.f32 %v3338_v58, %v751_v2  ;;  %v5173_v43 = vand.u32 15, %v3412_v28  ;;  %v693_v52 = vadd.f32 %v3399_v15, %v654_v45 }
 0x13c   : > { %v4012_v11 = vadd.f32 %v1802_v34, %v1766_v22  ;;  %v4014_v60 = vadd.f32 %v1974_v31, %v1938_v25  ;;  %v1263_v42 = vsel %vm1249_vm3, %v1234_v14, %v1235_v20  ;;  %v1264_v8 = vsel %vm1249_vm3, %v1233_v0, %v1234_v14 }
 0x13d   : > { %5172 = vst [vmem:[#allocation74_spill] sm:$0xff] %v4001_v48  ;;  %vm4007_vm14 = vcmp.eq.s32.totalorder %v5173_v43, 0  ;;  %v4022_v57 = vsel %vm1442_vm4, %v1427_v26, %v1428_v37  ;;  %v4026_v28 = vsel %vm1442_vm4, %v1426_v36, %v1427_v26  ;;  %v1592_v45 = vmul.f32 %v3388_v12, %v1264_v8 }
 0x13e   : > { %5176 = vst [vmem:[#allocation75_spill] sm:$0xff] %v4012_v11  ;;  %5177 = vst [vmem:[#allocation76_spill] sm:$0xff] %v4014_v60  ;;  %v1972_v22 = vmul.f32 %v3371_v7, %v751_v2  ;;  %v1764_v25 = vmul.f32 %v3368_v6, %v1264_v8  ;;  %v1936_v34 = vmul.f32 %v3391_v13, %v1264_v8  ;;  %v756_v20 = vmin.f32 %v724_v27, 6.0 }
 0x13f   : > { %v722_v17 = vmax.f32 %v690_v5, 0.0  ;;  %v4032_v31 = vadd.f32 %v1628_v47, %v1592_v45  ;;  %v725_v14 = vmax.f32 %v693_v52, 0.0  ;;  %v652_v37 = vmul.f32 %v3382_v10, %v3749_v18 }
 0x140   : > { %v657_v26 = vmul.f32 %v3788_v19, %v3382_v10  ;;  %v4040_v0 = vsel %vm3968_vm13, 0.0, %v1263_v42  ;;  %v4042_v2 = vadd.f32 %v1800_v50, %v1764_v25  ;;  %v4044_v36 = vadd.f32 %v1972_v22, %v1936_v34 }
 0x141   : > { %5178 = vst [vmem:[#allocation77_spill] sm:$0xff] %v4032_v31  ;;  %5179 = vst [vmem:[#allocation78_spill] sm:$0xff] %v4040_v0  ;;  %v1239_v40 = vrot.slane %v756_v20, 7  ;;  %v1432_v27 = vrot.slane %v756_v20, 1  ;;  %v4047_v5 = vmul.f32 %v3333_v55, %v756_v20  ;;  %v4050_v47 = vmul.f32 %v3338_v58, %v756_v20 }
 0x142   : > { %5180 = vst [vmem:[#allocation79_spill] sm:$0xff] %v4042_v2  ;;  %v754_v18 = vmin.f32 %v722_v17, 6.0  ;;  %v4053_v43 = vmul.f32 %v3371_v7, %v756_v20  ;;  %v4055_v19 = vmin.f32 %v725_v14, 6.0  ;;  %v691_v41 = vadd.f32 %v3399_v15, %v652_v37 }
 0x143   : > { %5181 = vst [vmem:[#allocation80_spill] sm:$0xff] %v4047_v5  ;;  %5182 = vst [vmem:[#allocation81_spill] sm:$0xff] %v4050_v47  ;;  %v696_v50 = vadd.f32 %v3399_v15, %v657_v26  ;;  %v5184_v22 = vand.u32 15, %v3417_v32 }
 0x144   : > { %5183 = vst [vmem:[#allocation82_spill] sm:$0xff] %v4053_v43  ;;  %v1237_v52 = vrot.slane %v754_v18, 7  ;;  %v1430_v42 = vrot.slane %v754_v18, 1  ;;  %v1631_v8 = vmul.f32 %v3333_v55, %v754_v18  ;;  %v1803_v45 = vmul.f32 %v3338_v58, %v754_v18 }
 0x145   : > { %vm4063_vm15 = vcmp.eq.s32.totalorder %v5184_v22, 0  ;;  %v1975_v34 = vmul.f32 %v3371_v7, %v754_v18  ;;  %v5059_v20 = vrot.slane %v4055_v19, 7  ;;  %v1634_v14 = vmul.f32 %v3333_v55, %v4055_v19 }
 0x146   : > { %v1261_v37 = vsel %vm1249_vm3, %v1236_v54, %v1237_v52  ;;  %v4076_v26 = vsel %vm1442_vm4, %v1429_v46, %v1430_v42  ;;  %v1806_v32 = vmul.f32 %v3338_v58, %v4055_v19  ;;  %v1978_v18 = vmul.f32 %v3371_v7, %v4055_v19 }
 0x147   : > { %v1366_v22 = vsel %vm4007_vm14, 0.0, %v1261_v37  ;;  %v1258_v17 = vsel %vm1249_vm3, %v1239_v40, %v5059_v20  ;;  %v5187_v54 = vrot.slane %v4055_v19, 1  ;;  %v723_v5 = vmax.f32 %v691_v41, 0.0 }
 0x148   : > { %v1595_v47 = vmul.f32 %v3388_v12, %v1366_v22  ;;  %v1767_v43 = vmul.f32 %v3368_v6, %v1366_v22  ;;  %v1939_v48 = vmul.f32 %v3391_v13, %v1366_v22  ;;  %v1598_v24 = vmul.f32 %v3388_v12, %v1258_v17 }
 0x149   : > { %v4092_v46 = vsel %vm1442_vm4, %v1432_v27, %v5187_v54  ;;  %v1770_v37 = vmul.f32 %v3368_v6, %v1258_v17  ;;  %v1942_v11 = vmul.f32 %v3391_v13, %v1258_v17  ;;  %v755_v20 = vmin.f32 %v723_v5, 6.0 }
 0x14a   : > { %5188 = vst [vmem:[#allocation83_spill] sm:$0xff] %v4092_v46  ;;  %v728_v31 = vmax.f32 %v696_v50, 0.0  ;;  %v4100_v16 = vadd.f32 %v1631_v8, %v1595_v47  ;;  %v4102_v60 = vadd.f32 %v1803_v45, %v1767_v43  ;;  %v4104_v54 = vadd.f32 %v1975_v34, %v1939_v48 }
 0x14b   : > { %v4106_v41 = vadd.f32 %v1634_v14, %v1598_v24  ;;  %v4108_v46 = vadd.f32 %v1806_v32, %v1770_v37  ;;  %v4110_v2 = vadd.f32 %v1978_v18, %v1942_v11  ;;  %v1238_v22 = vrot.slane %v755_v20, 7 }
 0x14c   : > { %v1431_v30 = vrot.slane %v755_v20, 1  ;;  %v1632_v0 = vmul.f32 %v3333_v55, %v755_v20  ;;  %v1804_v17 = vmul.f32 %v3338_v58, %v755_v20  ;;  %v4114_v5 = vmin.f32 %v728_v31, 6.0 }
 0x14d   : > { %5189 = vst [vmem:[#allocation84_spill] sm:$0xff] %v4106_v41  ;;  %5190 = vst [vmem:[#allocation85_spill] sm:$0xff] %v4108_v46  ;;  %v655_v47 = vmul.f32 %v3382_v10, %v3796_v62  ;;  %v1259_v48 = vsel %vm1249_vm3, %v1238_v22, %v1239_v40  ;;  %v1260_v43 = vsel %vm1249_vm3, %v1237_v52, %v1238_v22 }
 0x14e   : > { %v4124_v11 = vsel %vm1442_vm4, %v1431_v30, %v1432_v27  ;;  %v4128_v50 = vsel %vm1442_vm4, %v1430_v42, %v1431_v30  ;;  %v1596_v31 = vmul.f32 %v3388_v12, %v1260_v43  ;;  %v1768_v8 = vmul.f32 %v3368_v6, %v1260_v43 }
 0x14f   : > { %v1940_v62 = vmul.f32 %v3391_v13, %v1260_v43  ;;  %v1976_v45 = vmul.f32 %v3371_v7, %v755_v20  ;;  %v4136_v40 = vsel %vm4063_vm15, 0.0, %v1259_v48  ;;  %v5062_v52 = vrot.slane %v4114_v5, 7 }
 0x150   : > { %v5063_v27 = vrot.slane %v4114_v5, 1  ;;  %v4142_v30 = vmul.f32 %v3333_v55, %v4114_v5  ;;  %v5192_v42 = vand.u32 15, %v3420_v33  ;;  %v4150_v14 = vadd.f32 %v1632_v0, %v1596_v31 }
 0x151   : > { %v4152_v20 = vadd.f32 %v1804_v17, %v1768_v8  ;;  %v4154_v25 = vadd.f32 %v1976_v45, %v1940_v62  ;;  %v4158_v32 = vmul.f32 %v3338_v58, %v4114_v5  ;;  %v694_v18 = vadd.f32 %v3399_v15, %v655_v47 }
 0x152   : > { %5191 = vst [vmem:[#allocation86_spill] sm:$0xff] %v4142_v30  ;;  %vm4146_vm0 = vcmp.eq.s32.totalorder %v5192_v42, 0  ;;  %v658_v24 = vmul.f32 %v3807_v63, %v3382_v10  ;;  %v656_v33 = vmul.f32 %v3382_v10, %v3818_v23  ;;  %v661_v0 = vmul.f32 %v3855_v53, %v3382_v10 }
 0x153   : > { %5195 = vst [vmem:[#allocation87_spill] sm:$0xff] %v4158_v32  ;;  %v659_v37 = vmul.f32 %v3382_v10, %v3862_v1  ;;  %v662_v22 = vmul.f32 %v3876_v21, %v3382_v10  ;;  %v660_v17 = vmul.f32 %v3382_v10, %v3885_v35  ;;  %v5196_v47 = vrot.slane %v3553_v9, 1 }
 0x154   : > { %v5197_v48 = vrot.slane %v3479_v29, 1  ;;  %v726_v23 = vmax.f32 %v694_v18, 0.0  ;;  %v697_v53 = vadd.f32 %v3399_v15, %v658_v24  ;;  %v695_v43 = vadd.f32 %v3399_v15, %v656_v33 }
 0x155   : > { %v700_v1 = vadd.f32 %v3399_v15, %v661_v0  ;;  %v698_v21 = vadd.f32 %v3399_v15, %v659_v37  ;;  %v701_v31 = vadd.f32 %v3399_v15, %v662_v22  ;;  %v4187_v10 = vadd.f32 %v3399_v15, %v660_v17 }
 0x156   : > { %v4179_v63 = vsel %vm1442_vm4, %v5197_v48, %v5196_v47  ;;  %v5198_v9 = vrot.slane %v3450_v56, 1  ;;  %v5199_v35 = vrot.slane %v3481_v49, 1  ;;  %v758_v62 = vmin.f32 %v726_v23, 6.0 }
 0x157   : > { %v729_v45 = vmax.f32 %v697_v53, 0.0  ;;  %v727_v42 = vmax.f32 %v695_v43, 0.0  ;;  %v732_v18 = vmax.f32 %v700_v1, 0.0  ;;  %v4199_v24 = vmul.f32 %v3371_v7, %v4114_v5 }
 0x158   : > { %v4195_v8 = vsel %vm1442_vm4, %v5199_v35, %v5198_v9  ;;  %v730_v33 = vmax.f32 %v698_v21, 0.0  ;;  %v733_v0 = vmax.f32 %v701_v31, 0.0  ;;  %v5201_v15 = vmov %v5199_v35 }
 0x159   : > { %5200 = vst [vmem:[#allocation88_spill] sm:$0xff] %v4199_v24  ;;  %v5202_v56 = vrot.slane %v3455_v61, 1  ;;  %v1241_v22 = vrot.slane %v758_v62, 7  ;;  %v1434_v17 = vrot.slane %v758_v62, 1  ;;  %v1635_v47 = vmul.f32 %v3333_v55, %v758_v62 }
 0x15a   : > { %v5203_v48 = vand.u32 15, %v3426_v38  ;;  %v1807_v49 = vmul.f32 %v3338_v58, %v758_v62  ;;  %v1979_v43 = vmul.f32 %v3371_v7, %v758_v62  ;;  %v761_v1 = vmin.f32 %v729_v45, 6.0 }
 0x15b   : > { %v4207_v37 = vsel %vm1442_vm4, %v5202_v56, %v5201_v15  ;;  %v759_v21 = vmin.f32 %v727_v42, 6.0  ;;  %v5206_v31 = vrot.slane %v4055_v19, 7  ;;  %v5207_v35 = vrot.slane %v4055_v19, 1 }
 0x15c   : > { %vm4212_vm2 = vcmp.eq.s32.totalorder %v5203_v48, 0  ;;  %v4229_v15 = vmin.f32 %v732_v18, 6.0  ;;  %v4231_v56 = vmin.f32 %v730_v33, 6.0  ;;  %v1244_v45 = vrot.slane %v761_v1, 7 }
 0x15d   : > { %v1257_v9 = vsel %vm1249_vm3, %v5206_v31, %v1241_v22  ;;  %v4227_v38 = vsel %vm1442_vm4, %v5207_v35, %v1434_v17  ;;  %v1437_v42 = vrot.slane %v761_v1, 1  ;;  %v1638_v48 = vmul.f32 %v3333_v55, %v761_v1 }
 0x15e   : > { %v1370_v62 = vsel %vm4146_vm0, 0.0, %v1257_v9  ;;  %v1810_v35 = vmul.f32 %v3338_v58, %v761_v1  ;;  %v5208_v18 = vand.u32 15, %v3429_v39  ;;  %v1254_v34 = vsel %vm1249_vm3, %v5062_v52, %v1244_v45 }
 0x15f   : > { %v1599_v53 = vmul.f32 %v3388_v12, %v1370_v62  ;;  %v1771_v31 = vmul.f32 %v3368_v6, %v1370_v62  ;;  %v1943_v19 = vmul.f32 %v3391_v13, %v1370_v62  ;;  %v4254_v9 = vsel %vm1442_vm4, %v5063_v27, %v1437_v42 }
 0x160   : > { %vm4242_vm5 = vcmp.eq.s32.totalorder %v5208_v18, 0  ;;  %5211 = vst [vmem:[#allocation89_spill] sm:$0xff] %v4254_v9  ;;  %v1982_v62 = vmul.f32 %v3371_v7, %v761_v1  ;;  %v1242_v30 = vrot.slane %v759_v21, 7  ;;  %v1602_v24 = vmul.f32 %v3388_v12, %v1254_v34 }
 0x161   : > { %v4257_v32 = vadd.f32 %v1635_v47, %v1599_v53  ;;  %v4259_v39 = vadd.f32 %v1807_v49, %v1771_v31  ;;  %v4261_v18 = vadd.f32 %v1979_v43, %v1943_v19  ;;  %v1774_v41 = vmul.f32 %v3368_v6, %v1254_v34 }
 0x162   : > { %v1946_v52 = vmul.f32 %v3391_v13, %v1254_v34  ;;  %v5214_v46 = vrot.slane %v4114_v5, 7  ;;  %v1256_v1 = vsel %vm1249_vm3, %v1241_v22, %v1242_v30  ;;  %v5215_v47 = vand.u32 15, %v3440_v44 }
 0x163   : > { %5212 = vst [vmem:[#allocation90_spill] sm:$0xff] %v4257_v32  ;;  %5213 = vst [vmem:[#allocation91_spill] sm:$0xff] %v4259_v39  ;;  %v4278_v49 = vadd.f32 %v1638_v48, %v1602_v24  ;;  %v1435_v43 = vrot.slane %v759_v21, 1  ;;  %v1600_v31 = vmul.f32 %v3388_v12, %v1256_v1  ;;  %v765_v19 = vmin.f32 %v733_v0, 6.0 }
 0x164   : > { %v1255_v27 = vsel %vm1249_vm3, %v1242_v30, %v5214_v46  ;;  %vm4274_vm6 = vcmp.eq.s32.totalorder %v5215_v47, 15  ;;  %v4281_v34 = vadd.f32 %v1810_v35, %v1774_v41  ;;  %v4283_v32 = vadd.f32 %v1982_v62, %v1946_v52  ;;  %v5225_v35 = vld [vmem:[#allocation2_spill] sm:$0xff] }
 0x165   : > { %5218 = vst [vmem:[#allocation92_spill] sm:$0xff] %v4278_v49  ;;  %v1636_v46 = vmul.f32 %v3333_v55, %v759_v21  ;;  %v1772_v30 = vmul.f32 %v3368_v6, %v1256_v1  ;;  %v5221_v44 = vand.u32 15, %v3323_v51  ;;  %v5224_v24 = vrot.slane %v4114_v5, 1 }
 0x166   : > { %5219 = vst [vmem:[#allocation93_spill] sm:$0xff] %v4281_v34  ;;  %5220 = vst [vmem:[#allocation94_spill] sm:$0xff] %v4283_v32  ;;  %v4301_v41 = vsel %vm1442_vm4, %v1434_v17, %v1435_v43  ;;  %v1808_v52 = vmul.f32 %v3338_v58, %v759_v21  ;;  %v1944_v0 = vmul.f32 %v3391_v13, %v1256_v1  ;;  %v5226_v62 = vand.u32 15, %v5225_v35 }
 0x167   : > { %vm4289_vm7 = vcmp.eq.s32.totalorder %v5221_v44, 0  ;;  %v4297_v48 = vsel %vm1442_vm4, %v1435_v43, %v5224_v24  ;;  %v4313_v5 = vsel %vm4212_vm2, 0.0, %v1255_v27  ;;  %v4315_v44 = vadd.f32 %v1636_v46, %v1600_v31  ;;  %v5231_v43 = vld [vmem:[#allocation4_spill] sm:$0xff] }
 0x168   : > { %vm4307_vm8 = vcmp.eq.s32.totalorder %v5226_v62, 15  ;;  %5229 = vst [vmem:[#allocation2_spill] sm:$0xff] %v4313_v5  ;;  %v1980_v24 = vmul.f32 %v3371_v7, %v759_v21  ;;  %v1247_v17 = vrot.slane %v4229_v15, 7  ;;  %v5232_v49 = vand.u32 15, %v5231_v43 }
 0x169   : > { %5230 = vst [vmem:[#allocation95_spill] sm:$0xff] %v4315_v44  ;;  %v4325_v35 = vadd.f32 %v1808_v52, %v1772_v30  ;;  %v1440_v62 = vrot.slane %v4229_v15, 1  ;;  %v4330_v27 = vmul.f32 %v3338_v58, %v4229_v15  ;;  %v1245_v23 = vrot.slane %v4231_v56, 7 }
 0x16a   : > { %vm4321_vm9 = vcmp.eq.s32.totalorder %v5232_v49, 15  ;;  %v4333_v31 = vadd.f32 %v1980_v24, %v1944_v0  ;;  %v4337_v21 = vmul.f32 %v3371_v7, %v4229_v15  ;;  %v1438_v49 = vrot.slane %v4231_v56, 1 }
 0x16b   : > { %5235 = vst [vmem:[#allocation4_spill] sm:$0xff] %v4325_v35  ;;  %5236 = vst [vmem:[#allocation96_spill] sm:$0xff] %v4330_v27  ;;  %v1639_v46 = vmul.f32 %v3333_v55, %v4231_v56  ;;  %v1253_v30 = vsel %vm1249_vm3, %v1244_v45, %v1245_v23  ;;  %v1811_v52 = vmul.f32 %v3338_v58, %v4231_v56  ;;  %v1248_v43 = vrot.slane %v765_v19, 7 }
 0x16c   : > { %5237 = vst [vmem:[#allocation97_spill] sm:$0xff] %v4333_v31  ;;  %5238 = vst [vmem:[#allocation98_spill] sm:$0xff] %v4337_v21  ;;  %v1441_v27 = vrot.slane %v765_v19, 1  ;;  %v1374_v0 = vsel %vm4242_vm5, 0.0, %v1253_v30  ;;  %v4350_v15 = vsel %vm1442_vm4, %v1437_v42, %v1438_v49  ;;  %v1983_v24 = vmul.f32 %v3371_v7, %v4231_v56 }
 0x16d   : > { %5239 = vst [vmem:[#allocation99_spill] sm:$0xff] %v4350_v15  ;;  %v1814_v21 = vmul.f32 %v3338_v58, %v765_v19  ;;  %v1603_v34 = vmul.f32 %v3388_v12, %v1374_v0  ;;  %v1775_v45 = vmul.f32 %v3368_v6, %v1374_v0  ;;  %v1947_v44 = vmul.f32 %v3391_v13, %v1374_v0 }
 0x16e   : > { %v1250_v32 = vsel %vm1249_vm3, %v1247_v17, %v1248_v43  ;;  %v5240_v33 = vrot.slane %v3455_v61, 7  ;;  %v1443_v30 = vsel %vm1442_vm4, %v1440_v62, %v1441_v27  ;;  %v5241_v56 = vrot.slane %v3455_v61, 1 }
 0x16f   : > { %v1778_v9 = vmul.f32 %v3368_v6, %v1250_v32  ;;  %v4371_v39 = vadd.f32 %v1639_v46, %v1603_v34  ;;  %v4373_v0 = vadd.f32 %v1811_v52, %v1775_v45  ;;  %v4375_v5 = vadd.f32 %v1983_v24, %v1947_v44 }
 0x170   : > { %v1281_v42 = vsel %vm1249_vm3, %v1248_v43, %v5240_v33  ;;  %v1474_v35 = vsel %vm1442_vm4, %v1441_v27, %v5241_v56  ;;  %v4382_v43 = vld [vmem:[%s5027_s4 + $0x8] ss:$0 sm:$0xff]  ;;  %v1950_v27 = vmul.f32 %v3391_v13, %v1250_v32  ;;  %v1986_v34 = vmul.f32 %v3371_v7, %v765_v19 }
 0x171   : > { %5242 = vst [vmem:[#allocation100_spill] sm:$0xff] %v4371_v39  ;;  %5243 = vst [vmem:[#allocation101_spill] sm:$0xff] %v4373_v0  ;;  %v1570_v15 = vsel %vm4274_vm6, 0.0, %v1474_v35  ;;  %v1846_v61 = vadd.f32 %v1814_v21, %v1778_v9  ;;  %v5245_v33 = vld [vmem:[#allocation3_spill] sm:$0xff]  ;;  %v5247_v53 = vmax.f32 %v4187_v10, 0.0  ;;  %v1346_v52 = vsel %vm4289_vm7, 0.0, %v1281_v42 }
 0x172   : > { %5244 = vst [vmem:[#allocation102_spill] sm:$0xff] %v4375_v5  ;;  %v1882_v31 = vmul.f32 %v5245_v33, %v1570_v15  ;;  %v4388_v46 = vmul.f32 %v5245_v33, %v1443_v30  ;;  %v2054_v44 = vmul.f32 %v4382_v43, %v1570_v15  ;;  %v2018_v9 = vadd.f32 %v1986_v34, %v1950_v27  ;;  %v5255_v27 = vld [vmem:[#allocation14_spill] sm:$0xff]  ;;  %v5256_v34 = vld [vmem:[#allocation8_spill] sm:$0xff] }
 0x173   : > { %v763_v35 = vmin.f32 %v5247_v53, 6.0  ;;  %v4398_v21 = vmul.f32 %v4382_v43, %v1443_v30  ;;  %v1540_v32 = vsel %vm4307_vm8, 0.0, %v4195_v8  ;;  %v1542_v10 = vsel %vm4321_vm9, 0.0, %v4179_v63 }
 0x174   : > { %5246 = vst [vmem:[#allocation3_spill] sm:$0xff] %v4388_v46  ;;  %v4395_v24 = vadd.f32 %v1882_v31, %v1846_v61  ;;  %v4407_v22 = vadd.f32 %v2054_v44, %v2018_v9  ;;  %v1575_v30 = vmul.f32 %v3388_v12, %v1346_v52  ;;  %v5254_v61 = vld [vmem:[#allocation18_spill] sm:$0xff]  ;;  %v774_v0 = vadd.s32 40, %v3323_v51 }
 0x175   : > { %5249 = vst [vmem:[#allocation104_spill] sm:$0xff] %v4398_v21  ;;  %v1246_v19 = vrot.slane %v763_v35, 7  ;;  %v1439_v45 = vrot.slane %v763_v35, 1  ;;  %v1640_v15 = vmul.f32 %v3333_v55, %v763_v35  ;;  %v1812_v31 = vmul.f32 %v3338_v58, %v763_v35 }
 0x176   : > { %5248 = vst [vmem:[#allocation103_spill] sm:$0xff] %v4395_v24  ;;  %5250 = vst [vmem:[#allocation105_spill] sm:$0xff] %v4407_v22  ;;  %v1984_v42 = vmul.f32 %v3371_v7, %v763_v35  ;;  %v1643_v44 = vadd.f32 %v5256_v34, %v1575_v30  ;;  %v5262_v22 = vld [vmem:[#allocation17_spill] sm:$0xff]  ;;  %v1747_v21 = vmul.f32 %v3368_v6, %v1346_v52 }
 0x177   : > { %v4414_v47 = vsel %vm1249_vm3, %v1246_v19, %v1247_v17  ;;  %v1252_v8 = vsel %vm1249_vm3, %v1245_v23, %v1246_v19  ;;  %v4420_v55 = vsel %vm1442_vm4, %v1439_v45, %v1440_v62  ;;  %v4424_v63 = vsel %vm1442_vm4, %v1438_v49, %v1439_v45  ;;  %v5257_v62 = vld [vmem:[#allocation5_spill] sm:$0xff]  ;;  %v5261_v45 = vld [vmem:[#allocation15_spill] sm:$0xff] }
 0x178   : > { %5251 = vst [vmem:[#allocation106_spill] sm:$0xff] %v4414_v47  ;;  %5252 = vst [vmem:[#allocation107_spill] sm:$0xff] %v4420_v55  ;;  %v1604_v58 = vmul.f32 %v3388_v12, %v1252_v8  ;;  %v1776_v1 = vmul.f32 %v3368_v6, %v1252_v8  ;;  %v1948_v56 = vmul.f32 %v3391_v13, %v1252_v8  ;;  %v5263_v30 = vld [vmem:[#allocation13_spill] sm:$0xff]  ;;  %v5267_v47 = vld [vmem:[#allocation7_spill] sm:$0xff]  ;;  %vm2577_vm4 = vcmask 195584  }
 0x179   : > { %5253 = vst [vmem:[#allocation108_spill] sm:$0xff] %v4424_v63  ;;  %v1577_v17 = vmul.f32 %v3388_v12, %v5254_v61  ;;  %v1578_v23 = vmul.f32 %v3388_v12, %v5255_v27  ;;  %v1679_v53 = vmul.f32 %v5257_v62, %v4207_v37  ;;  %v1680_v49 = vmul.f32 %v5257_v62, %v1540_v32 }
 0x17a   : > { %v4437_v35 = vadd.f32 %v1640_v15, %v1604_v58  ;;  %v4439_v9 = vadd.f32 %v1812_v31, %v1776_v1  ;;  %v4441_v19 = vadd.f32 %v1984_v42, %v1948_v56  ;;  %v1681_v8 = vmul.f32 %v5257_v62, %v5261_v45  ;;  %v5264_v58 = vld [vmem:[#allocation9_spill] sm:$0xff]  ;;  %v5265_v56 = vld [vmem:[#allocation16_spill] sm:$0xff] }
 0x17b   : > { %v1711_v46 = vadd.f32 %v1679_v53, %v1643_v44  ;;  %v1712_v24 = vadd.f32 %v1680_v49, %v5262_v22  ;;  %v1748_v34 = vmul.f32 %v3368_v6, %v5263_v30  ;;  %v1682_v39 = vmul.f32 %v5257_v62, %v1542_v10 }
 0x17c   : > { %5258 = vst [vmem:[#allocation18_spill] sm:$0xff] %v4437_v35  ;;  %5259 = vst [vmem:[#allocation14_spill] sm:$0xff] %v4439_v9  ;;  %v1749_v15 = vmul.f32 %v3368_v6, %v5254_v61  ;;  %v1750_v31 = vmul.f32 %v3368_v6, %v5255_v27  ;;  %v1852_v42 = vmul.f32 %v5245_v33, %v1540_v32 }
 0x17d   : > { %5260 = vst [vmem:[#allocation8_spill] sm:$0xff] %v4441_v19  ;;  %v1815_v1 = vadd.f32 %v5264_v58, %v1747_v21  ;;  %v1816_v44 = vadd.f32 %v5265_v56, %v1748_v34  ;;  %v1851_v52 = vmul.f32 %v5245_v33, %v4207_v37  ;;  %v1853_v22 = vmul.f32 %v5245_v33, %v5261_v45  ;;  %v5266_v56 = vld [vmem:[#allocation11_spill] sm:$0xff]  ;;  %v5268_v19 = vld [vmem:[#allocation12_spill] sm:$0xff] }
 0x17e   : > { %v1854_v53 = vmul.f32 %v5245_v33, %v1542_v10  ;;  %v1921_v49 = vmul.f32 %v3391_v13, %v5254_v61  ;;  %v1922_v30 = vmul.f32 %v3391_v13, %v5255_v27  ;;  %v1958_v32 = vmul.f32 %v3371_v7, %v3479_v29  ;;  %v5269_v27 = vld [vmem:[#allocation30_spill] sm:$0xff] }
 0x17f   : > { %v1883_v21 = vadd.f32 %v1851_v52, %v1815_v1  ;;  %v1884_v58 = vadd.f32 %v1852_v42, %v1816_v44  ;;  %v2025_v34 = vmul.f32 %v4382_v43, %v5261_v45  ;;  %v2026_v37 = vmul.f32 %v4382_v43, %v1542_v10  ;;  %v5270_v29 = vld [vmem:[#allocation6_spill] sm:$0xff] }
 0x180   : > { %v1989_v35 = vadd.f32 %v5266_v56, %v1921_v49  ;;  %v1990_v9 = vadd.f32 %v1958_v32, %v1922_v30  ;;  %v1817_v61 = vadd.f32 %v5267_v47, %v1749_v15  ;;  %v1818_v5 = vadd.f32 %v5268_v19, %v1750_v31  ;;  %v4482_v52 = vld [vmem:[%s5028_s5] ss:$0 sm:$0xff]  ;;  %v5271_v47 = vld [vmem:[#allocation25_spill] sm:$0xff] }
 0x181   : > { %v2027_v63 = vmul.f32 %v4382_v43, %v5269_v27  ;;  %v776_v7 = vadd.s32 56, %v3323_v51  ;;  %v1645_v42 = vadd.f32 %v5270_v29, %v1577_v17  ;;  %v840_v44 = vand.u32 15, %v774_v0  ;;  %v5272_v31 = vld [vmem:[#allocation10_spill] sm:$0xff]  ;;  %v5273_v17 = vld [vmem:[#allocation29_spill] sm:$0xff] }
 0x182   : > { %v2057_v1 = vadd.f32 %v2025_v34, %v1989_v35  ;;  %v2058_v45 = vadd.f32 %v2026_v37, %v1990_v9  ;;  %v1885_v10 = vadd.f32 %v1853_v22, %v1817_v61  ;;  %v1886_v49 = vadd.f32 %v1854_v53, %v1818_v5  ;;  %v4489_v0 = vld [vmem:[%s5029_s6] ss:$0 sm:$0xff]  ;;  %v5275_v61 = vld [vmem:[#allocation33_spill] sm:$0xff] }
 0x183   : > { %v2059_v15 = vadd.f32 %v2027_v63, %v5271_v47  ;;  %v854_v19 = vand.u32 15, %v776_v7  ;;  %v1646_v30 = vadd.f32 %v5272_v31, %v1578_v23  ;;  %vm1383_vm3 = vcmp.eq.s32.totalorder %v840_v44, 15  ;;  %v5278_v44 = vld [vmem:[#allocation34_spill] sm:$0xff] }
 0x184   : > { %v2375_v32 = vadd.f32 %v2057_v1, %v1883_v21  ;;  %v2376_v56 = vadd.f32 %v2058_v45, %v1884_v58  ;;  %v2217_v55 = vadd.f32 %v1885_v10, %v1711_v46  ;;  %v1544_v35 = vsel %vm1383_vm3, 0.0, %v5273_v17  ;;  %v5274_v21 = vld [vmem:[#allocation37_spill] sm:$0xff]  ;;  %v5279_v10 = vld [vmem:[#allocation22_spill] sm:$0xff] }
 0x185   : > { %v2218_v9 = vadd.f32 %v1886_v49, %v1712_v24  ;;  %vm1385_vm10 = vcmp.eq.s32.totalorder %v854_v19, 15  ;;  %v1713_v5 = vadd.f32 %v1681_v8, %v1645_v42  ;;  %v2028_v23 = vmul.f32 %v4382_v43, %v1544_v35  ;;  %v5276_v42 = vld [vmem:[#allocation24_spill] sm:$0xff] }
 0x186   : > { %v2414_v63 = vmul.f32 %v4482_v52, %v2375_v32  ;;  %v2415_v22 = vmul.f32 %v4482_v52, %v2376_v56  ;;  %v2377_v53 = vadd.f32 %v2217_v55, %v2059_v15  ;;  %v4496_v46 = vsel %vm1385_vm10, 0.0, %v5274_v21  ;;  %v5277_v55 = vld [vmem:[#allocation32_spill] sm:$0xff] }
 0x187   : > { %v1714_v58 = vadd.f32 %v1682_v39, %v1646_v30  ;;  %v1855_v34 = vmul.f32 %v5245_v33, %v5269_v27  ;;  %v1856_v37 = vmul.f32 %v5245_v33, %v1544_v35  ;;  %v2060_v7 = vadd.f32 %v2028_v23, %v5275_v61  ;;  %v5280_v30 = vld [vmem:[#allocation21_spill] sm:$0xff] }
 0x188   : > { %v2453_v24 = vadd.f32 %v4489_v0, %v2414_v63  ;;  %v2454_v8 = vadd.f32 %v4489_v0, %v2415_v22  ;;  %v2416_v29 = vmul.f32 %v4482_v52, %v2377_v53  ;;  %v1925_v39 = vmul.f32 %v3391_v13, %v5278_v44 }
 0x189   : > { %v1887_v1 = vadd.f32 %v1855_v34, %v5276_v42  ;;  %v1888_v45 = vadd.f32 %v1856_v37, %v5277_v55  ;;  %v2029_v49 = vmul.f32 %v4382_v43, %v5279_v10  ;;  %v2378_v19 = vadd.f32 %v2218_v9, %v2060_v7  ;;  %v5281_v37 = vld [vmem:[#allocation28_spill] sm:$0xff]  ;;  %v5282_v55 = vld [vmem:[#allocation23_spill] sm:$0xff] }
 0x18a   : > { %v2485_v47 = vmax.f32 %v2453_v24, 0.0  ;;  %v2486_v15 = vmax.f32 %v2454_v8, 0.0  ;;  %v2455_v31 = vadd.f32 %v4489_v0, %v2416_v29  ;;  %v1993_v32 = vadd.f32 %v5280_v30, %v1925_v39 }
 0x18b   : > { %v2030_v56 = vmul.f32 %v4382_v43, %v4496_v46  ;;  %v2219_v17 = vadd.f32 %v1887_v1, %v1713_v5  ;;  %v2220_v63 = vadd.f32 %v1888_v45, %v1714_v58  ;;  %v2417_v53 = vmul.f32 %v4482_v52, %v2378_v19 }
 0x18c   : > { %v2517_v22 = vmin.f32 %v2485_v47, 6.0  ;;  %v2518_v23 = vmin.f32 %v2486_v15, 6.0  ;;  %v2487_v21 = vmax.f32 %v2455_v31, 0.0  ;;  %v2061_v34 = vadd.f32 %v2029_v49, %v1993_v32  ;;  %v5283_v49 = vld [vmem:[#allocation31_spill] sm:$0xff]  ;;  %v5284_v32 = vld [vmem:[#allocation46_spill] sm:$0xff] }
 0x18d   : > { %v2062_v61 = vadd.f32 %v2030_v56, %v5281_v37  ;;  %v778_v24 = vadd.s32 72, %v3323_v51  ;;  %v1683_v9 = vmul.f32 %v5257_v62, %v5269_v27  ;;  %v2456_v7 = vadd.f32 %v4489_v0, %v2417_v53 }
 0x18e   : > { %v2549_v8 = vpack.c.bf16 %v2518_v23, %v2517_v22  ;;  %v2519_v29 = vmin.f32 %v2487_v21, 6.0  ;;  %v1684_v5 = vmul.f32 %v5257_v62, %v1544_v35  ;;  %v2379_v58 = vadd.f32 %v2219_v17, %v2061_v34  ;;  %v5285_v17 = vld [vmem:[#allocation20_spill] sm:$0xff]  ;;  %v5286_v22 = vld [vmem:[#allocation47_spill] sm:$0xff] }
 0x18f   : > { %v2380_v42 = vadd.f32 %v2220_v63, %v2062_v61  ;;  %v868_v1 = vand.u32 15, %v778_v24  ;;  %v1715_v45 = vadd.f32 %v1683_v9, %v5282_v55  ;;  %v2488_v39 = vmax.f32 %v2456_v7, 0.0  ;;  %v5287_v34 = vld [vmem:[#allocation27_spill] sm:$0xff] }
 0x190   : > { %3115 = vmatprep.mubr.msk.bf16.mxu1 %vm2577_vm4, %v2549_v8  ;;  %v1716_v47 = vadd.f32 %v1684_v5, %v5283_v49  ;;  %v1753_v15 = vmul.f32 %v3368_v6, %v5278_v44  ;;  %v1857_v27 = vmul.f32 %v5245_v33, %v5279_v10  ;;  %v2418_v19 = vmul.f32 %v4482_v52, %v2379_v58  ;;  %v5288_v8 = vld [vmem:[#allocation41_spill] sm:$0xff] }
 0x191   : > { %v2419_v35 = vmul.f32 %v4482_v52, %v2380_v42  ;;  %vm1387_vm11 = vcmp.eq.s32.totalorder %v868_v1, 15  ;;  %v1858_v31 = vmul.f32 %v5245_v33, %v4496_v46  ;;  %v2520_v30 = vmin.f32 %v2488_v39, 6.0  ;;  %v5289_v1 = vld [vmem:[#allocation51_spill] sm:$0xff] }
 0x192   : > { %v1548_v56 = vsel %vm1387_vm11, 0.0, %v5284_v32  ;;  %v1821_v63 = vadd.f32 %v5285_v17, %v1753_v15  ;;  %v2031_v23 = vmul.f32 %v4382_v43, %v5286_v22  ;;  %v2457_v53 = vadd.f32 %v4489_v0, %v2418_v19  ;;  %v5290_v17 = vld [vmem:[#allocation19_spill] sm:$0xff] }
 0x193   : > { %v2458_v21 = vadd.f32 %v4489_v0, %v2419_v35  ;;  %v1890_v37 = vadd.f32 %v1858_v31, %v5287_v34  ;;  %v2032_v61 = vmul.f32 %v4382_v43, %v1548_v56  ;;  %v2550_v24 = vpack.c.bf16 %v2520_v30, %v2519_v29 }
 0x194   : > { %v1889_v9 = vadd.f32 %v1857_v27, %v1821_v63  ;;  %v2063_v7 = vadd.f32 %v2031_v23, %v5288_v8  ;;  %v780_v5 = vadd.s32 88, %v3323_v51  ;;  %v2489_v58 = vmax.f32 %v2457_v53, 0.0  ;;  %v5294_v8 = vld [vmem:[#allocation49_spill] sm:$0xff] }
 0x195   : > { %v2490_v42 = vmax.f32 %v2458_v21, 0.0  ;;  %v2064_v55 = vadd.f32 %v2032_v61, %v5289_v1  ;;  %v2222_v39 = vadd.f32 %v1890_v37, %v1716_v47  ;;  %3116 = vmatmul.mubr.msk.bf16.vlgmr.msra.gmra.mrb[0].mxu1 %vm2577_vm4, %v2550_v24  ;;  %v1581_v19 = vmul.f32 %v3388_v12, %v5278_v44  ;;  %v5291_v44 = vld [vmem:[#allocation55_spill] sm:$0xff]  ;;  %v5292_v21 = vld [vmem:[#allocation26_spill] sm:$0xff] }
 0x196   : > { %v2221_v49 = vadd.f32 %v1889_v9, %v1715_v45  ;;  %v882_v15 = vand.u32 15, %v780_v5  ;;  %v1685_v29 = vmul.f32 %v5257_v62, %v5279_v10  ;;  %v2521_v27 = vmin.f32 %v2489_v58, 6.0  ;;  %v5295_v5 = vld [vmem:[#allocation38_spill] sm:$0xff] }
 0x197   : > { %v2522_v35 = vmin.f32 %v2490_v42, 6.0  ;;  %v2382_v31 = vadd.f32 %v2222_v39, %v2064_v55  ;;  %v1686_v30 = vmul.f32 %v5257_v62, %v4496_v46  ;;  %v1649_v47 = vadd.f32 %v5290_v17, %v1581_v19  ;;  %v5293_v46 = vld [vmem:[#allocation40_spill] sm:$0xff]  ;;  %v5296_v55 = vld [vmem:[#allocation50_spill] sm:$0xff] }
 0x198   : > { %v2381_v32 = vadd.f32 %v2221_v49, %v2063_v7  ;;  %vm1389_vm12 = vcmp.eq.s32.totalorder %v882_v15, 15  ;;  %v1859_v45 = vmul.f32 %v5245_v33, %v5286_v22  ;;  %v1860_v61 = vmul.f32 %v5245_v33, %v1548_v56 }
 0x199   : > { %v2551_v63 = vpack.c.bf16 %v2522_v35, %v2521_v27  ;;  %v2421_v23 = vmul.f32 %v4482_v52, %v2382_v31  ;;  %v1550_v53 = vsel %vm1389_vm12, 0.0, %v5291_v44  ;;  %v1718_v10 = vadd.f32 %v1686_v30, %v5292_v21  ;;  %v5298_v35 = vld [vmem:[#allocation45_spill] sm:$0xff]  ;;  %v5299_v44 = vld [vmem:[#allocation39_spill] sm:$0xff] }
 0x19a   : > { %v2420_v34 = vmul.f32 %v4482_v52, %v2381_v32  ;;  %v1717_v37 = vadd.f32 %v1685_v29, %v1649_v47  ;;  %v1891_v24 = vadd.f32 %v1859_v45, %v5293_v46  ;;  %v1929_v7 = vmul.f32 %v3391_v13, %v5294_v8  ;;  %v5297_v29 = vld [vmem:[#allocation42_spill] sm:$0xff]  ;;  %v5300_v46 = vld [vmem:[#allocation48_spill] sm:$0xff] }
 0x19b   : > { %3119 = vmatprep.mubr.msk.bf16.mxu1 %vm2577_vm4, %v2551_v63  ;;  %v2460_v9 = vadd.f32 %v4489_v0, %v2421_v23  ;;  %v2033_v58 = vmul.f32 %v4382_v43, %v5295_v5  ;;  %v2034_v42 = vmul.f32 %v4382_v43, %v1550_v53  ;;  %v1892_v39 = vadd.f32 %v1860_v61, %v5296_v55 }
 0x19c   : > { %v2459_v1 = vadd.f32 %v4489_v0, %v2420_v34  ;;  %v2223_v49 = vadd.f32 %v1891_v24, %v1717_v37  ;;  %v782_v15 = vadd.s32 104, %v3323_v51  ;;  %v1997_v27 = vadd.f32 %v5297_v29, %v1929_v7  ;;  %v5301_v7 = vld [vmem:[#allocation36_spill] sm:$0xff] }
 0x19d   : > { %v2492_v19 = vmax.f32 %v2460_v9, 0.0  ;;  %v2066_v31 = vadd.f32 %v2034_v42, %v5298_v35  ;;  %v1687_v30 = vmul.f32 %v5257_v62, %v5286_v22  ;;  %v2224_v17 = vadd.f32 %v1892_v39, %v1718_v10  ;;  %v5302_v29 = vld [vmem:[#allocation44_spill] sm:$0xff]  ;;  %v5303_v35 = vld [vmem:[#allocation59_spill] sm:$0xff] }
 0x19e   : > { %v2491_v32 = vmax.f32 %v2459_v1, 0.0  ;;  %v896_v47 = vand.u32 15, %v782_v15  ;;  %v1688_v45 = vmul.f32 %v5257_v62, %v1548_v56  ;;  %v2065_v23 = vadd.f32 %v2033_v58, %v1997_v27 }
 0x19f   : > { %v2524_v63 = vmin.f32 %v2492_v19, 6.0  ;;  %v1719_v21 = vadd.f32 %v1687_v30, %v5299_v44  ;;  %v1757_v34 = vmul.f32 %v3368_v6, %v5294_v8  ;;  %v2384_v61 = vadd.f32 %v2224_v17, %v2066_v31  ;;  %v5304_v17 = vld [vmem:[#allocation66_spill] sm:$0xff] }
 0x1a0   : > { %v2523_v37 = vmin.f32 %v2491_v32, 6.0  ;;  %vm1391_vm13 = vcmp.eq.s32.totalorder %v896_v47, 15  ;;  %v1720_v24 = vadd.f32 %v1688_v45, %v5300_v46  ;;  %v2383_v9 = vadd.f32 %v2223_v49, %v2065_v23 }
 0x1a1   : > { %v1552_v22 = vsel %vm1391_vm13, 0.0, %v3912_v59  ;;  %v1825_v10 = vadd.f32 %v5301_v7, %v1757_v34  ;;  %v1861_v56 = vmul.f32 %v5245_v33, %v5295_v5  ;;  %v2423_v58 = vmul.f32 %v4482_v52, %v2384_v61  ;;  %v5305_v34 = vld [vmem:[#allocation35_spill] sm:$0xff] }
 0x1a2   : > { %v2552_v42 = vpack.c.bf16 %v2524_v63, %v2523_v37  ;;  %v1862_v1 = vmul.f32 %v5245_v33, %v1550_v53  ;;  %v2035_v55 = vmul.f32 %v4382_v43, %v3916_v4  ;;  %v2422_v39 = vmul.f32 %v4482_v52, %v2383_v9 }
 0x1a3   : > { %v1893_v15 = vadd.f32 %v1861_v56, %v1825_v10  ;;  %v2036_v49 = vmul.f32 %v4382_v43, %v1552_v22  ;;  %v784_v59 = vadd.s32 120, %v3323_v51  ;;  %v2462_v19 = vadd.f32 %v4489_v0, %v2423_v58  ;;  %v5306_v56 = vld [vmem:[#allocation70_spill] sm:$0xff] }
 0x1a4   : > { %3120 = vmatmul.mubr.msk.bf16.gmra.mrb[4].mxu1 %vm2577_vm4, %v2552_v42  ;;  %v1894_v27 = vadd.f32 %v1862_v1, %v5302_v29  ;;  %v2067_v31 = vadd.f32 %v2035_v55, %v5303_v35  ;;  %v1585_v30 = vmul.f32 %v3388_v12, %v5294_v8  ;;  %v2461_v32 = vadd.f32 %v4489_v0, %v2422_v39  ;;  %v5310_v35 = vld [vmem:[#allocation58_spill] sm:$0xff] }
 0x1a5   : > { %v2068_v47 = vadd.f32 %v2036_v49, %v5304_v17  ;;  %v2225_v45 = vadd.f32 %v1893_v15, %v1719_v21  ;;  %v910_v63 = vand.u32 15, %v784_v59  ;;  %v2494_v23 = vmax.f32 %v2462_v19, 0.0  ;;  %v5308_v49 = vld [vmem:[#allocation65_spill] sm:$0xff]  ;;  %v5309_v59 = vld [vmem:[#allocation56_spill] sm:$0xff] }
 0x1a6   : > { %v2226_v44 = vadd.f32 %v1894_v27, %v1720_v24  ;;  %v1653_v37 = vadd.f32 %v5305_v34, %v1585_v30  ;;  %v1689_v61 = vmul.f32 %v5257_v62, %v5295_v5  ;;  %v2493_v46 = vmax.f32 %v2461_v32, 0.0  ;;  %v5307_v24 = vld [vmem:[#allocation43_spill] sm:$0xff]  ;;  %v5311_v17 = vld [vmem:[#allocation64_spill] sm:$0xff]  ;;  %v5313_v34 = vld [vmem:[#allocation62_spill] sm:$0xff] }
 0x1a7   : > { %v2385_v9 = vadd.f32 %v2225_v45, %v2067_v31  ;;  %vm1393_vm14 = vcmp.eq.s32.totalorder %v910_v63, 15  ;;  %v1690_v7 = vmul.f32 %v5257_v62, %v1550_v53  ;;  %v2526_v10 = vmin.f32 %v2494_v23, 6.0  ;;  %v5312_v45 = vld [vmem:[#allocation54_spill] sm:$0xff] }
 0x1a8   : > { %v2386_v8 = vadd.f32 %v2226_v44, %v2068_v47  ;;  %v4603_v42 = vsel %vm1393_vm14, 0.0, %v5306_v56  ;;  %v1721_v58 = vadd.f32 %v1689_v61, %v1653_v37  ;;  %v2525_v21 = vmin.f32 %v2493_v46, 6.0 }
 0x1a9   : > { %v2424_v1 = vmul.f32 %v4482_v52, %v2385_v9  ;;  %v1722_v55 = vadd.f32 %v1690_v7, %v5307_v24  ;;  %v1863_v39 = vmul.f32 %v5245_v33, %v3916_v4  ;;  %v1864_v15 = vmul.f32 %v5245_v33, %v1552_v22 }
 0x1aa   : > { %v2425_v5 = vmul.f32 %v4482_v52, %v2386_v8  ;;  %v1933_v53 = vmul.f32 %v3391_v13, %v5308_v49  ;;  %v2037_v19 = vmul.f32 %v4382_v43, %v5309_v59  ;;  %v2553_v29 = vpack.c.bf16 %v2526_v10, %v2525_v21 }
 0x1ab   : > { %v2463_v27 = vadd.f32 %v4489_v0, %v2424_v1  ;;  %v1895_v31 = vadd.f32 %v1863_v39, %v5310_v35  ;;  %v2038_v30 = vmul.f32 %v4382_v43, %v4603_v42  ;;  %v1896_v47 = vadd.f32 %v1864_v15, %v5311_v17  ;;  %v5314_v1 = vld [vmem:[#allocation57_spill] sm:$0xff] }
 0x1ac   : > { %v2464_v32 = vadd.f32 %v4489_v0, %v2425_v5  ;;  %v2001_v63 = vadd.f32 %v5312_v45, %v1933_v53  ;;  %v786_v23 = vadd.s32 136, %v3323_v51  ;;  %3123 = vmatprep.mubr.msk.bf16.mxu1 %vm2577_vm4, %v2553_v29  ;;  %v1691_v46 = vmul.f32 %v5257_v62, %v3916_v4  ;;  %v5315_v29 = vld [vmem:[#allocation63_spill] sm:$0xff] }
 0x1ad   : > { %v2495_v44 = vmax.f32 %v2463_v27, 0.0  ;;  %v2070_v37 = vadd.f32 %v2038_v30, %v5313_v34  ;;  %v2227_v61 = vadd.f32 %v1895_v31, %v1721_v58  ;;  %v2228_v10 = vadd.f32 %v1896_v47, %v1722_v55  ;;  %v5316_v27 = vld [vmem:[#allocation53_spill] sm:$0xff] }
 0x1ae   : > { %v2496_v9 = vmax.f32 %v2464_v32, 0.0  ;;  %v2069_v7 = vadd.f32 %v2037_v19, %v2001_v63  ;;  %v924_v8 = vand.u32 15, %v786_v23  ;;  %v1692_v21 = vmul.f32 %v5257_v62, %v1552_v22  ;;  %v5317_v23 = vld [vmem:[#allocation61_spill] sm:$0xff] }
 0x1af   : > { %v2527_v56 = vmin.f32 %v2495_v44, 6.0  ;;  %v1723_v24 = vadd.f32 %v1691_v46, %v5314_v1  ;;  %v1761_v39 = vmul.f32 %v3368_v6, %v5308_v49  ;;  %v2388_v53 = vadd.f32 %v2228_v10, %v2070_v37 }
 0x1b0   : > { %v2528_v5 = vmin.f32 %v2496_v9, 6.0  ;;  %v2387_v15 = vadd.f32 %v2227_v61, %v2069_v7  ;;  %vm1395_vm15 = vcmp.eq.s32.totalorder %v924_v8, 15  ;;  %v1724_v4 = vadd.f32 %v1692_v21, %v5315_v29  ;;  %v5319_v29 = vld [vmem:[#allocation60_spill] sm:$0xff] }
 0x1b1   : > { %v1556_v58 = vsel %vm1395_vm15, 0.0, %v4022_v57  ;;  %v1829_v19 = vadd.f32 %v5316_v27, %v1761_v39  ;;  %v1865_v55 = vmul.f32 %v5245_v33, %v5309_v59  ;;  %v2427_v31 = vmul.f32 %v4482_v52, %v2388_v53 }
 0x1b2   : > { %v2554_v35 = vpack.c.bf16 %v2528_v5, %v2527_v56  ;;  %v2426_v22 = vmul.f32 %v4482_v52, %v2387_v15  ;;  %v1866_v30 = vmul.f32 %v5245_v33, %v4603_v42  ;;  %v2039_v17 = vmul.f32 %v4382_v43, %v4026_v28  ;;  %v5318_v56 = vld [vmem:[#allocation52_spill] sm:$0xff] }
 0x1b3   : > { %v1897_v32 = vadd.f32 %v1865_v55, %v1829_v19  ;;  %v2040_v57 = vmul.f32 %v4382_v43, %v1556_v58  ;;  %v788_v47 = vadd.s32 152, %v3323_v51  ;;  %v2466_v63 = vadd.f32 %v4489_v0, %v2427_v31  ;;  %v5321_v31 = vld [vmem:[#allocation73_spill] sm:$0xff] }
 0x1b4   : > { %3124 = vmatmul.mubr.msk.bf16.gmra.mrb[8].mxu1 %vm2577_vm4, %v2554_v35  ;;  %v2465_v45 = vadd.f32 %v4489_v0, %v2426_v22  ;;  %v1898_v44 = vadd.f32 %v1866_v30, %v5317_v23  ;;  %v1589_v34 = vmul.f32 %v3388_v12, %v5308_v49  ;;  %v2071_v37 = vadd.f32 %v2039_v17, %v3996_v3  ;;  %v5320_v35 = vld [vmem:[#allocation78_spill] sm:$0xff]  ;;  %v5322_v30 = vld [vmem:[#allocation71_spill] sm:$0xff] }
 0x1b5   : > { %v2072_v61 = vadd.f32 %v2040_v57, %v4044_v36  ;;  %v2229_v46 = vadd.f32 %v1897_v32, %v1723_v24  ;;  %v938_v9 = vand.u32 15, %v788_v47  ;;  %v2498_v10 = vmax.f32 %v2466_v63, 0.0  ;;  %v5323_v47 = vld [vmem:[#allocation79_spill] sm:$0xff]  ;;  %v5324_v63 = vld [vmem:[#allocation69_spill] sm:$0xff] }
 0x1b6   : > { %v2497_v7 = vmax.f32 %v2465_v45, 0.0  ;;  %v2230_v8 = vadd.f32 %v1898_v44, %v1724_v4  ;;  %v1657_v21 = vadd.f32 %v5318_v56, %v1589_v34  ;;  %v1693_v39 = vmul.f32 %v5257_v62, %v5309_v59 }
 0x1b7   : > { %v2389_v1 = vadd.f32 %v2229_v46, %v2071_v37  ;;  %vm1397_vm0 = vcmp.eq.s32.totalorder %v938_v9, 15  ;;  %v1694_v5 = vmul.f32 %v5257_v62, %v4603_v42  ;;  %v2530_v15 = vmin.f32 %v2498_v10, 6.0  ;;  %v5325_v37 = vld [vmem:[#allocation76_spill] sm:$0xff] }
 0x1b8   : > { %v2529_v49 = vmin.f32 %v2497_v7, 6.0  ;;  %v2390_v3 = vadd.f32 %v2230_v8, %v2072_v61  ;;  %v1558_v36 = vsel %vm1397_vm0, 0.0, %v4076_v26  ;;  %v1725_v53 = vadd.f32 %v1693_v39, %v1657_v21  ;;  %v5326_v39 = vld [vmem:[#allocation72_spill] sm:$0xff] }
 0x1b9   : > { %v2428_v24 = vmul.f32 %v4482_v52, %v2389_v1  ;;  %v1726_v4 = vadd.f32 %v1694_v5, %v5319_v29  ;;  %v1867_v27 = vmul.f32 %v5245_v33, %v4026_v28  ;;  %v1868_v59 = vmul.f32 %v5245_v33, %v1556_v58  ;;  %v5327_v29 = vld [vmem:[#allocation77_spill] sm:$0xff] }
 0x1ba   : > { %v2555_v19 = vpack.c.bf16 %v2530_v15, %v2529_v49  ;;  %v2429_v55 = vmul.f32 %v4482_v52, %v2390_v3  ;;  %v1937_v42 = vmul.f32 %v3391_v13, %v5320_v35  ;;  %v2041_v32 = vmul.f32 %v4382_v43, %v5322_v30 }
 0x1bb   : > { %v2467_v22 = vadd.f32 %v4489_v0, %v2428_v24  ;;  %v1899_v26 = vadd.f32 %v1867_v27, %v5321_v31  ;;  %v2042_v17 = vmul.f32 %v4382_v43, %v1558_v36  ;;  %v1900_v45 = vadd.f32 %v1868_v59, %v5323_v47  ;;  %v5328_v27 = vld [vmem:[#allocation68_spill] sm:$0xff] }
 0x1bc   : > { %3127 = vmatprep.mubr.msk.bf16.mxu1 %vm2577_vm4, %v2555_v19  ;;  %v2468_v57 = vadd.f32 %v4489_v0, %v2429_v55  ;;  %v2005_v23 = vadd.f32 %v5324_v63, %v1937_v42  ;;  %v790_v44 = vadd.s32 168, %v3323_v51  ;;  %v1695_v9 = vmul.f32 %v5257_v62, %v4026_v28 }
 0x1bd   : > { %v2499_v34 = vmax.f32 %v2467_v22, 0.0  ;;  %v2074_v61 = vadd.f32 %v2042_v17, %v5325_v37  ;;  %v2231_v46 = vadd.f32 %v1899_v26, %v1725_v53  ;;  %v2232_v8 = vadd.f32 %v1900_v45, %v1726_v4 }
 0x1be   : > { %v2500_v7 = vmax.f32 %v2468_v57, 0.0  ;;  %v2073_v10 = vadd.f32 %v2041_v32, %v2005_v23  ;;  %v952_v56 = vand.u32 15, %v790_v44  ;;  %v1696_v1 = vmul.f32 %v5257_v62, %v1556_v58  ;;  %v5329_v57 = vld [vmem:[#allocation75_spill] sm:$0xff] }
 0x1bf   : > { %v2531_v21 = vmin.f32 %v2499_v34, 6.0  ;;  %v1727_v5 = vadd.f32 %v1695_v9, %v5326_v39  ;;  %v1765_v49 = vmul.f32 %v3368_v6, %v5320_v35  ;;  %v2392_v24 = vadd.f32 %v2232_v8, %v2074_v61  ;;  %v5330_v9 = vld [vmem:[#allocation67_spill] sm:$0xff] }
 0x1c0   : > { %v2532_v15 = vmin.f32 %v2500_v7, 6.0  ;;  %v2391_v3 = vadd.f32 %v2231_v46, %v2073_v10  ;;  %vm1399_vm2 = vcmp.eq.s32.totalorder %v952_v56, 15  ;;  %v1728_v28 = vadd.f32 %v1696_v1, %v5327_v29 }
 0x1c1   : > { %v1560_v53 = vsel %vm1399_vm2, 0.0, %v4124_v11  ;;  %v1833_v19 = vadd.f32 %v5328_v27, %v1765_v49  ;;  %v1869_v4 = vmul.f32 %v5245_v33, %v5322_v30  ;;  %v2431_v59 = vmul.f32 %v4482_v52, %v2392_v24 }
 0x1c2   : > { %v2556_v55 = vpack.c.bf16 %v2532_v15, %v2531_v21  ;;  %v2430_v58 = vmul.f32 %v4482_v52, %v2391_v3  ;;  %v1870_v42 = vmul.f32 %v5245_v33, %v1558_v36  ;;  %v2043_v31 = vmul.f32 %v4382_v43, %v4128_v50 }
 0x1c3   : > { %v1901_v22 = vadd.f32 %v1869_v4, %v1833_v19  ;;  %v2044_v11 = vmul.f32 %v4382_v43, %v1560_v53  ;;  %v792_v26 = vadd.s32 184, %v3323_v51  ;;  %v2470_v17 = vadd.f32 %v4489_v0, %v2431_v59 }
 0x1c4   : > { %3128 = vmatmul.mubr.msk.bf16.gmra.mrb[12].mxu1 %vm2577_vm4, %v2556_v55  ;;  %v2469_v32 = vadd.f32 %v4489_v0, %v2430_v58  ;;  %v1902_v47 = vadd.f32 %v1870_v42, %v5329_v57  ;;  %v1593_v45 = vmul.f32 %v3388_v12, %v5320_v35  ;;  %v2075_v63 = vadd.f32 %v2043_v31, %v4104_v54  ;;  %v5333_v58 = vld [vmem:[#allocation82_spill] sm:$0xff] }
 0x1c5   : > { %v2076_v23 = vadd.f32 %v2044_v11, %v4154_v25  ;;  %v2233_v44 = vadd.f32 %v1901_v22, %v1727_v5  ;;  %v966_v34 = vand.u32 15, %v792_v26  ;;  %v2502_v61 = vmax.f32 %v2470_v17, 0.0  ;;  %v5331_v5 = vld [vmem:[#allocation74_spill] sm:$0xff] }
 0x1c6   : > { %v2501_v37 = vmax.f32 %v2469_v32, 0.0  ;;  %v2234_v46 = vadd.f32 %v1902_v47, %v1728_v28  ;;  %v1661_v7 = vadd.f32 %v5330_v9, %v1593_v45  ;;  %v1697_v8 = vmul.f32 %v5257_v62, %v5322_v30  ;;  %v5332_v28 = vld [vmem:[#allocation83_spill] sm:$0xff] }
 0x1c7   : > { %v2393_v10 = vadd.f32 %v2233_v44, %v2075_v63  ;;  %vm1401_vm5 = vcmp.eq.s32.totalorder %v966_v34, 15  ;;  %v1698_v56 = vmul.f32 %v5257_v62, %v1558_v36  ;;  %v2534_v35 = vmin.f32 %v2502_v61, 6.0 }
 0x1c8   : > { %v2533_v21 = vmin.f32 %v2501_v37, 6.0  ;;  %v2394_v1 = vadd.f32 %v2234_v46, %v2076_v23  ;;  %v1562_v54 = vsel %vm1401_vm5, 0.0, %v4227_v38  ;;  %v1729_v39 = vadd.f32 %v1697_v8, %v1661_v7  ;;  %v5334_v37 = vld [vmem:[#allocation81_spill] sm:$0xff] }
 0x1c9   : > { %v2432_v25 = vmul.f32 %v4482_v52, %v2393_v10  ;;  %v1730_v49 = vadd.f32 %v1698_v56, %v5331_v5  ;;  %v1871_v15 = vmul.f32 %v5245_v33, %v4128_v50  ;;  %v1872_v30 = vmul.f32 %v5245_v33, %v1560_v53  ;;  %v5336_v5 = vld [vmem:[#allocation97_spill] sm:$0xff] }
 0x1ca   : > { %v2557_v3 = vpack.c.bf16 %v2534_v35, %v2533_v21  ;;  %v2433_v24 = vmul.f32 %v4482_v52, %v2394_v1  ;;  %v1941_v36 = vmul.f32 %v3391_v13, %v4136_v40  ;;  %v2045_v27 = vmul.f32 %v4382_v43, %v5332_v28  ;;  %v5335_v35 = vld [vmem:[#allocation85_spill] sm:$0xff] }
 0x1cb   : > { %v2471_v29 = vadd.f32 %v4489_v0, %v2432_v25  ;;  %v1903_v38 = vadd.f32 %v1871_v15, %v4102_v60  ;;  %v2046_v19 = vmul.f32 %v4382_v43, %v1562_v54  ;;  %v1904_v55 = vadd.f32 %v1872_v30, %v4152_v20 }
 0x1cc   : > { %3131 = vmatprep.mubr.msk.bf16.mxu1 %vm2577_vm4, %v2557_v3  ;;  %v2472_v4 = vadd.f32 %v4489_v0, %v2433_v24  ;;  %v2009_v59 = vadd.f32 %v5333_v58, %v1941_v36  ;;  %v794_v42 = vadd.s32 200, %v3323_v51  ;;  %v1699_v60 = vmul.f32 %v5257_v62, %v4128_v50 }
 0x1cd   : > { %v2503_v22 = vmax.f32 %v2471_v29, 0.0  ;;  %v2078_v31 = vadd.f32 %v2046_v19, %v4110_v2  ;;  %v2235_v11 = vadd.f32 %v1903_v38, %v1729_v39  ;;  %v2236_v17 = vadd.f32 %v1904_v55, %v1730_v49  ;;  %v5337_v29 = vld [vmem:[#allocation80_spill] sm:$0xff] }
 0x1ce   : > { %v2504_v26 = vmax.f32 %v2472_v4, 0.0  ;;  %v2077_v32 = vadd.f32 %v2045_v27, %v2009_v59  ;;  %v980_v57 = vand.u32 15, %v794_v42  ;;  %v1700_v45 = vmul.f32 %v5257_v62, %v1560_v53 }
 0x1cf   : > { %v2535_v47 = vmin.f32 %v2503_v22, 6.0  ;;  %v1731_v20 = vadd.f32 %v1699_v60, %v4100_v16  ;;  %v1769_v63 = vmul.f32 %v3368_v6, %v4136_v40  ;;  %v2396_v34 = vadd.f32 %v2236_v17, %v2078_v31  ;;  %v5339_v31 = vld [vmem:[#allocation84_spill] sm:$0xff]  ;;  %v5340_v17 = vld [vmem:[#allocation2_spill] sm:$0xff] }
 0x1d0   : > { %v2536_v23 = vmin.f32 %v2504_v26, 6.0  ;;  %v2395_v44 = vadd.f32 %v2235_v11, %v2077_v32  ;;  %vm1403_vm6 = vcmp.eq.s32.totalorder %v980_v57, 15  ;;  %v1732_v50 = vadd.f32 %v1700_v45, %v4150_v14 }
 0x1d1   : > { %v1564_v2 = vsel %vm1403_vm6, 0.0, %v4297_v48  ;;  %v1837_v61 = vadd.f32 %v5334_v37, %v1769_v63  ;;  %v1873_v46 = vmul.f32 %v5245_v33, %v5332_v28  ;;  %v2435_v16 = vmul.f32 %v4482_v52, %v2396_v34  ;;  %v5343_v34 = vld [vmem:[#allocation4_spill] sm:$0xff] }
 0x1d2   : > { %v2558_v9 = vpack.c.bf16 %v2536_v23, %v2535_v47  ;;  %v2434_v53 = vmul.f32 %v4482_v52, %v2395_v44  ;;  %v1874_v7 = vmul.f32 %v5245_v33, %v1562_v54  ;;  %v2047_v8 = vmul.f32 %v4382_v43, %v4301_v41  ;;  %v5341_v47 = vld [vmem:[#allocation91_spill] sm:$0xff]  ;;  %v5344_v37 = vld [vmem:[#allocation88_spill] sm:$0xff] }
 0x1d3   : > { %v1905_v10 = vadd.f32 %v1873_v46, %v1837_v61  ;;  %v2048_v48 = vmul.f32 %v4382_v43, %v1564_v2  ;;  %v796_v14 = vadd.s32 216, %v3323_v51  ;;  %v2474_v21 = vadd.f32 %v4489_v0, %v2435_v16 }
 0x1d4   : > { %3132 = vmatmul.mubr.msk.bf16.gmra.mrb[16].mxu1 %vm2577_vm4, %v2558_v9  ;;  %v2473_v56 = vadd.f32 %v4489_v0, %v2434_v53  ;;  %v1906_v1 = vadd.f32 %v1874_v7, %v5335_v35  ;;  %v1597_v25 = vmul.f32 %v3388_v12, %v4136_v40  ;;  %v2079_v39 = vadd.f32 %v2047_v8, %v4261_v18  ;;  %v5338_v18 = vld [vmem:[#allocation99_spill] sm:$0xff]  ;;  %v5345_v53 = vld [vmem:[#allocation94_spill] sm:$0xff] }
 0x1d5   : > { %v2080_v49 = vadd.f32 %v2048_v48, %v5336_v5  ;;  %v2237_v15 = vadd.f32 %v1905_v10, %v1731_v20  ;;  %v994_v3 = vand.u32 15, %v796_v14  ;;  %v2506_v30 = vmax.f32 %v2474_v21, 0.0  ;;  %v5342_v20 = vld [vmem:[#allocation89_spill] sm:$0xff] }
 0x1d6   : > { %v2505_v24 = vmax.f32 %v2473_v56, 0.0  ;;  %v2238_v36 = vadd.f32 %v1906_v1, %v1732_v50  ;;  %v1665_v38 = vadd.f32 %v5337_v29, %v1597_v25  ;;  %v1701_v19 = vmul.f32 %v5257_v62, %v5332_v28  ;;  %v5346_v1 = vld [vmem:[#allocation90_spill] sm:$0xff] }
 0x1d7   : > { %v2397_v27 = vadd.f32 %v2237_v15, %v2079_v39  ;;  %vm1405_vm7 = vcmp.eq.s32.totalorder %v994_v3, 15  ;;  %v1702_v4 = vmul.f32 %v5257_v62, %v1562_v54  ;;  %v2538_v40 = vmin.f32 %v2506_v30, 6.0  ;;  %v5347_v3 = vld [vmem:[#allocation107_spill] sm:$0xff] }
 0x1d8   : > { %v2537_v55 = vmin.f32 %v2505_v24, 6.0  ;;  %v2398_v58 = vadd.f32 %v2238_v36, %v2080_v49  ;;  %v1566_v59 = vsel %vm1405_vm7, 0.0, %v5338_v18  ;;  %v1733_v22 = vadd.f32 %v1701_v19, %v1665_v38  ;;  %v5348_v30 = vld [vmem:[#allocation95_spill] sm:$0xff] }
 0x1d9   : > { %v2436_v42 = vmul.f32 %v4482_v52, %v2397_v27  ;;  %v1734_v11 = vadd.f32 %v1702_v4, %v5339_v31  ;;  %v1875_v60 = vmul.f32 %v5245_v33, %v4301_v41  ;;  %v1876_v28 = vmul.f32 %v5245_v33, %v1564_v2  ;;  %v5349_v36 = vld [vmem:[#allocation87_spill] sm:$0xff] }
 0x1da   : > { %v2559_v26 = vpack.c.bf16 %v2538_v40, %v2537_v55  ;;  %v2437_v32 = vmul.f32 %v4482_v52, %v2398_v58  ;;  %v1945_v54 = vmul.f32 %v3391_v13, %v5340_v17  ;;  %v2049_v63 = vmul.f32 %v4382_v43, %v5342_v20  ;;  %v5350_v40 = vld [vmem:[#allocation108_spill] sm:$0xff] }
 0x1db   : > { %v2475_v57 = vadd.f32 %v4489_v0, %v2436_v42  ;;  %v1907_v45 = vadd.f32 %v1875_v60, %v5341_v47  ;;  %v2050_v23 = vmul.f32 %v4382_v43, %v1566_v59  ;;  %v1908_v50 = vadd.f32 %v1876_v28, %v5343_v34 }
 0x1dc   : > { %3135 = vmatprep.mubr.msk.bf16.mxu1 %vm2577_vm4, %v2559_v26  ;;  %v2476_v44 = vadd.f32 %v4489_v0, %v2437_v32  ;;  %v2013_v61 = vadd.f32 %v5344_v37, %v1945_v54  ;;  %v798_v46 = vadd.s32 232, %v3323_v51  ;;  %v1703_v10 = vmul.f32 %v5257_v62, %v4301_v41  ;;  %v5352_v32 = vld [vmem:[#allocation102_spill] sm:$0xff]  ;;  %v5353_v54 = vld [vmem:[#allocation8_spill] sm:$0xff] }
 0x1dd   : > { %v2507_v9 = vmax.f32 %v2475_v57, 0.0  ;;  %v2082_v16 = vadd.f32 %v2050_v23, %v5345_v53  ;;  %v2239_v7 = vadd.f32 %v1907_v45, %v1733_v22  ;;  %v2240_v14 = vadd.f32 %v1908_v50, %v1734_v11  ;;  %v5351_v11 = vld [vmem:[#allocation93_spill] sm:$0xff]  ;;  %v5354_v23 = vld [vmem:[#allocation86_spill] sm:$0xff] }
 0x1de   : > { %v2508_v8 = vmax.f32 %v2476_v44, 0.0  ;;  %v2081_v48 = vadd.f32 %v2049_v63, %v2013_v61  ;;  %v1008_v56 = vand.u32 15, %v798_v46  ;;  %v1704_v35 = vmul.f32 %v5257_v62, %v1564_v2  ;;  %v5355_v46 = vld [vmem:[#allocation106_spill] sm:$0xff] }
 0x1df   : > { %v2539_v21 = vmin.f32 %v2507_v9, 6.0  ;;  %v1735_v25 = vadd.f32 %v1703_v10, %v5346_v1  ;;  %v1773_v39 = vmul.f32 %v3368_v6, %v5340_v17  ;;  %v2400_v15 = vadd.f32 %v2240_v14, %v2082_v16 }
 0x1e0   : > { %v2540_v5 = vmin.f32 %v2508_v8, 6.0  ;;  %v2399_v49 = vadd.f32 %v2239_v7, %v2081_v48  ;;  %vm1407_vm8 = vcmp.eq.s32.totalorder %v1008_v56, 15  ;;  %v1736_v41 = vadd.f32 %v1704_v35, %v5348_v30  ;;  %v5356_v7 = vld [vmem:[#allocation92_spill] sm:$0xff] }
 0x1e1   : > { %v1568_v24 = vsel %vm1407_vm8, 0.0, %v5347_v3  ;;  %v1841_v29 = vadd.f32 %v5349_v36, %v1773_v39  ;;  %v1877_v38 = vmul.f32 %v5245_v33, %v5342_v20  ;;  %v2439_v19 = vmul.f32 %v4482_v52, %v2400_v15  ;;  %v5359_v15 = vld [vmem:[#allocation98_spill] sm:$0xff] }
 0x1e2   : > { %v2560_v27 = vpack.c.bf16 %v2540_v5, %v2539_v21  ;;  %v2438_v2 = vmul.f32 %v4482_v52, %v2399_v49  ;;  %v1878_v4 = vmul.f32 %v5245_v33, %v1566_v59  ;;  %v2051_v58 = vmul.f32 %v4382_v43, %v5350_v40  ;;  %v5357_v21 = vld [vmem:[#allocation101_spill] sm:$0xff]  ;;  %v5358_v5 = vld [vmem:[#allocation14_spill] sm:$0xff] }
 0x1e3   : > { %v1909_v55 = vadd.f32 %v1877_v38, %v1841_v29  ;;  %v2052_v18 = vmul.f32 %v4382_v43, %v1568_v24  ;;  %v799_v42 = vadd.s32 240, %v3323_v51  ;;  %v2478_v31 = vadd.f32 %v4489_v0, %v2439_v19  ;;  %v5361_v29 = vld [vmem:[#allocation18_spill] sm:$0xff] }
 0x1e4   : > { %3136 = vmatmul.mubr.msk.bf16.gmra.mrb[20].mxu1 %vm2577_vm4, %v2560_v27  ;;  %v2477_v22 = vadd.f32 %v4489_v0, %v2438_v2  ;;  %v1910_v60 = vadd.f32 %v1878_v4, %v5351_v11  ;;  %v1601_v26 = vmul.f32 %v3388_v12, %v5340_v17  ;;  %v2083_v28 = vadd.f32 %v2051_v58, %v5352_v32  ;;  %v5362_v2 = vld [vmem:[#allocation104_spill] sm:$0xff] }
 0x1e5   : > { %v2084_v57 = vadd.f32 %v2052_v18, %v5353_v54  ;;  %v2241_v47 = vadd.f32 %v1909_v55, %v1735_v25  ;;  %v1015_v45 = vand.u32 15, %v799_v42  ;;  %v2510_v63 = vmax.f32 %v2478_v31, 0.0 }
 0x1e6   : > { %v2509_v43 = vmax.f32 %v2477_v22, 0.0  ;;  %v2242_v51 = vadd.f32 %v1910_v60, %v1736_v41  ;;  %v1669_v44 = vadd.f32 %v5354_v23, %v1601_v26  ;;  %v1705_v50 = vmul.f32 %v5257_v62, %v5342_v20  ;;  %v5360_v41 = vld [vmem:[#allocation100_spill] sm:$0xff]  ;;  %v5365_v22 = vld [vmem:[#allocation105_spill] sm:$0xff] }
 0x1e7   : > { %v2401_v34 = vadd.f32 %v2241_v47, %v2083_v28  ;;  %vm1215_vm9 = vcmp.eq.s32.totalorder %v1015_v45, 0  ;;  %v1706_v37 = vmul.f32 %v5257_v62, %v1566_v59  ;;  %v2542_v12 = vmin.f32 %v2510_v63, 6.0 }
 0x1e8   : > { %v2541_v61 = vmin.f32 %v2509_v43, 6.0  ;;  %v2402_v17 = vadd.f32 %v2242_v51, %v2084_v57  ;;  %v1376_v9 = vsel %vm1215_vm9, 0.0, %v5355_v46  ;;  %v1737_v16 = vadd.f32 %v1705_v50, %v1669_v44 }
 0x1e9   : > { %v2440_v53 = vmul.f32 %v4482_v52, %v2401_v34  ;;  %v1738_v10 = vadd.f32 %v1706_v37, %v5356_v7  ;;  %v1879_v8 = vmul.f32 %v5245_v33, %v5350_v40  ;;  %v1880_v20 = vmul.f32 %v5245_v33, %v1568_v24 }
 0x1ea   : > { %v2561_v48 = vpack.c.bf16 %v2542_v12, %v2541_v61  ;;  %v2441_v14 = vmul.f32 %v4482_v52, %v2402_v17  ;;  %v1949_v59 = vmul.f32 %v3391_v13, %v1376_v9  ;;  %v1707_v1 = vmul.f32 %v5257_v62, %v5350_v40  ;;  %v5364_v40 = vld [vmem:[#allocation103_spill] sm:$0xff] }
 0x1eb   : > { %v2479_v56 = vadd.f32 %v4489_v0, %v2440_v53  ;;  %v1911_v35 = vadd.f32 %v1879_v8, %v5357_v21  ;;  %v1708_v25 = vmul.f32 %v5257_v62, %v1568_v24  ;;  %v1912_v49 = vadd.f32 %v1880_v20, %v5358_v5  ;;  %v5363_v24 = vld [vmem:[#allocation96_spill] sm:$0xff]  ;;  %v3161_v5 = vld [vmem:[%s3273_s20 + $0x18] sm:$0xff] }
 0x1ec   : > { %3139 = vmatprep.mubr.msk.bf16.mxu1 %vm2577_vm4, %v2561_v48  ;;  %v2480_v39 = vadd.f32 %v4489_v0, %v2441_v14  ;;  %v2017_v3 = vadd.f32 %v5359_v15, %v1949_v59  ;;  %v1777_v33 = vmul.f32 %v3368_v6, %v1376_v9  ;;  %v1739_v36 = vadd.f32 %v1707_v1, %v5360_v41  ;;  %v5366_v6 = vld [vmem:[#allocation3_spill] sm:$0xff]  ;;  %v4851_v9 = vld [vmem:[%s5032_s9] ss:$0 sm:$0xff] }
 0x1ed   : > { %v2511_v13 = vmax.f32 %v2479_v56, 0.0  ;;  %v2243_v30 = vadd.f32 %v1911_v35, %v1737_v16  ;;  %v1740_v38 = vadd.f32 %v1708_v25, %v5361_v29  ;;  %v2244_v62 = vadd.f32 %v1912_v49, %v1738_v10  ;;  %v3159_v56 = vld [vmem:[%s3273_s20 + $0x10] sm:$0xff]  ;;  %v3160_v1 = vld [vmem:[%s3273_s20] sm:$0xff]  ;;  %v3162_v15 = vld [vmem:[%s3273_s20 + $0x8] sm:$0xff] }
 0x1ee   : > { %v2512_v27 = vmax.f32 %v2480_v39, 0.0  ;;  %v2085_v19 = vadd.f32 %v5362_v2, %v2017_v3  ;;  %v1845_v4 = vadd.f32 %v5363_v24, %v1777_v33 }
 0x1ef   : > { %v2543_v55 = vmin.f32 %v2511_v13, 6.0  ;;  %v2246_v58 = vadd.f32 %v5364_v40, %v1740_v38  ;;  %v2404_v31 = vadd.f32 %v2244_v62, %v5365_v22  ;;  %v3163_v62 = vld [vmem:[%s3273_s20 + $0x30] sm:$0xff]  ;;  %v3166_v22 = vld [vmem:[%s3273_s20 + $0x28] sm:$0xff] }
 0x1f0   : > { %v2544_v18 = vmin.f32 %v2512_v27, 6.0  ;;  %v2403_v42 = vadd.f32 %v2243_v30, %v2085_v19  ;;  %v1913_v11 = vadd.f32 %v5366_v6, %v1845_v4 }
 0x1f1   : > { %v2445_v60 = vmul.f32 %v4482_v52, %v2246_v58  ;;  %v2443_v28 = vmul.f32 %v4482_v52, %v2404_v31 }
 0x1f2   : > { %v2562_v26 = vpack.c.bf16 %v2544_v18, %v2543_v55  ;;  %v2442_v32 = vmul.f32 %v4482_v52, %v2403_v42  ;;  %v2245_v54 = vadd.f32 %v1913_v11, %v1739_v36  ;;  %v3164_v55 = vld [vmem:[%s3273_s20 + $0x20] sm:$0xff]  ;;  %v3165_v18 = vld [vmem:[%s3273_s20 + $0x38] sm:$0xff] }
 0x1f3   : > { %v2484_v57 = vadd.f32 %v4489_v0, %v2445_v60  ;;  %v2482_v45 = vadd.f32 %v4489_v0, %v2443_v28 }
 0x1f4   : > { %3140 = vmatmul.mubr.msk.bf16.gmra.mrb[24].mxu1 %vm2577_vm4, %v2562_v26  ;;  %v2481_v47 = vadd.f32 %v4489_v0, %v2442_v32  ;;  %v2444_v43 = vmul.f32 %v4482_v52, %v2245_v54  ;;  %v4846_v52 = vld [vmem:[%s5031_s8] ss:$0 sm:$0xff] }
 0x1f5   : > { %v2516_v63 = vmax.f32 %v2484_v57, 0.0  ;;  %v2514_v23 = vmax.f32 %v2482_v45, 0.0 }
 0x1f6   : > { %v2513_v51 = vmax.f32 %v2481_v47, 0.0  ;;  %v2483_v44 = vadd.f32 %v4489_v0, %v2444_v43  ;;  %v3167_v43 = vld [vmem:[%s3273_s20 + $0x50] sm:$0xff] }
 0x1f7   : > { %v2546_v50 = vmin.f32 %v2514_v23, 6.0  ;;  %v2548_v61 = vmin.f32 %v2516_v63, 6.0  ;;  %v3168_v23 = vld [vmem:[%s3273_s20 + $0x40] sm:$0xff] }
 0x1f8   : > { %v2545_v34 = vmin.f32 %v2513_v51, 6.0  ;;  %v2515_v37 = vmax.f32 %v2483_v44, 0.0 }
 0x1fa   : > { %v2563_v12 = vpack.c.bf16 %v2546_v50, %v2545_v34  ;;  %v2547_v17 = vmin.f32 %v2515_v37, 6.0  ;;  %v3169_v50 = vld [vmem:[%s3273_s20 + $0x58] sm:$0xff] }
 0x1fc   : > { %3143 = vmatprep.mubr.msk.bf16.mxu1 %vm2577_vm4, %v2563_v12  ;;  %v2564_v46 = vpack.c.bf16 %v2548_v61, %v2547_v17  ;;  %v3170_v61 = vld [vmem:[%s3273_s20 + $0x48] sm:$0xff] }
 0x1fe   : > { %3144 = vmatmul.mubr.msk.bf16.gmra.mrb[28].mxu1 %vm2577_vm4, %v2564_v46 }
 0x268   : > { %v3117_v0 = vpop.f32.mrb[0].mxu1 }
 0x269   : > { %v2800_v53 = vmul.f32 %v3117_v0, %v4846_v52  ;;  %v2664_v16 = vpop.f32.mrb[1].mxu1 }
 0x26a   : > { %v2798_v7 = vmul.f32 %v4846_v52, %v2664_v16  ;;  %v3118_v10 = vpop.f32.mrb[2].mxu1 }
 0x26b   : > { %v2839_v8 = vadd.f32 %v4851_v9, %v2800_v53  ;;  %v2801_v48 = vmul.f32 %v3118_v10, %v4846_v52  ;;  %v2667_v14 = vpop.f32.mrb[3].mxu1 }
 0x26c   : > { %v2837_v20 = vadd.f32 %v4851_v9, %v2798_v7  ;;  %v2799_v59 = vmul.f32 %v4846_v52, %v2667_v14 }
 0x26d   : > { %v2871_v21 = vadd.f32 %v3159_v56, %v2839_v8  ;;  %v2840_v35 = vadd.f32 %v4851_v9, %v2801_v48 }
 0x26e   : > { %v2869_v25 = vadd.f32 %v3160_v1, %v2837_v20  ;;  %v2838_v39 = vadd.f32 %v4851_v9, %v2799_v59  ;;  %v3171_v20 = vld [vmem:[%s3273_s20 + $0x70] sm:$0xff] }
 0x26f   : > { %2903 = vst.msk [vmem:[%s4862_s27 + $0x10] sm:$0xff] %vm410_vm1, %v2871_v21  ;;  %v2872_v49 = vadd.f32 %v3161_v5, %v2840_v35  ;;  %v3172_v21 = vld [vmem:[%s3273_s20 + $0x60] sm:$0xff]  ;;  %v3174_v5 = vld [vmem:[%s3273_s20 + $0x68] sm:$0xff] }
 0x270   : > { %2901 = vst.msk [vmem:[%s4862_s27] sm:$0xff] %vm410_vm1, %v2869_v25  ;;  %v2870_v3 = vadd.f32 %v3162_v15, %v2838_v39  ;;  %v3173_v25 = vld [vmem:[%s3273_s20 + $0x78] sm:$0xff] }
 0x271   : > { %2904 = vst.msk [vmem:[%s4862_s27 + $0x18] sm:$0xff] %vm410_vm1, %v2872_v49 }
 0x272   : > { %2902 = vst.msk [vmem:[%s4862_s27 + $0x8] sm:$0xff] %vm410_vm1, %v2870_v3 }
 0x277   : > { %v3121_v33 = vpop.f32.mrb[4].mxu1 }
 0x278   : > { %v2804_v13 = vmul.f32 %v3121_v33, %v4846_v52  ;;  %v2680_v30 = vpop.f32.mrb[5].mxu1 }
 0x279   : > { %v2802_v41 = vmul.f32 %v4846_v52, %v2680_v30  ;;  %v3122_v36 = vpop.f32.mrb[6].mxu1 }
 0x27a   : > { %v2843_v29 = vadd.f32 %v4851_v9, %v2804_v13  ;;  %v2805_v38 = vmul.f32 %v3122_v36, %v4846_v52  ;;  %v2683_v27 = vpop.f32.mrb[7].mxu1 }
 0x27b   : > { %v2841_v2 = vadd.f32 %v4851_v9, %v2802_v41  ;;  %v2803_v19 = vmul.f32 %v4846_v52, %v2683_v27 }
 0x27c   : > { %v2875_v24 = vadd.f32 %v3163_v62, %v2843_v29  ;;  %v2844_v4 = vadd.f32 %v4851_v9, %v2805_v38 }
 0x27d   : > { %v2873_v40 = vadd.f32 %v3164_v55, %v2841_v2  ;;  %v2842_v58 = vadd.f32 %v4851_v9, %v2803_v19  ;;  %v3175_v2 = vld [vmem:[%s3273_s20 + $0x90] sm:$0xff] }
 0x27e   : > { %2907 = vst.msk [vmem:[%s4862_s27 + $0x30] sm:$0xff] %vm410_vm1, %v2875_v24  ;;  %v2876_v42 = vadd.f32 %v3165_v18, %v2844_v4  ;;  %v3176_v24 = vld [vmem:[%s3273_s20 + $0x80] sm:$0xff]  ;;  %v3178_v18 = vld [vmem:[%s3273_s20 + $0x88] sm:$0xff] }
 0x27f   : > { %2905 = vst.msk [vmem:[%s4862_s27 + $0x20] sm:$0xff] %vm410_vm1, %v2873_v40  ;;  %v2874_v31 = vadd.f32 %v3166_v22, %v2842_v58  ;;  %v3177_v40 = vld [vmem:[%s3273_s20 + $0x98] sm:$0xff] }
 0x280   : > { %2908 = vst.msk [vmem:[%s4862_s27 + $0x38] sm:$0xff] %vm410_vm1, %v2876_v42 }
 0x281   : > { %2906 = vst.msk [vmem:[%s4862_s27 + $0x28] sm:$0xff] %vm410_vm1, %v2874_v31 }
 0x287   : > { %v3125_v6 = vpop.f32.mrb[8].mxu1 }
 0x288   : > { %v2808_v11 = vmul.f32 %v3125_v6, %v4846_v52  ;;  %v2696_v60 = vpop.f32.mrb[9].mxu1 }
 0x289   : > { %v2806_v26 = vmul.f32 %v4846_v52, %v2696_v60  ;;  %v3126_v32 = vpop.f32.mrb[10].mxu1 }
 0x28a   : > { %v2847_v28 = vadd.f32 %v4851_v9, %v2808_v11  ;;  %v2809_v54 = vmul.f32 %v3126_v32, %v4846_v52  ;;  %v2699_v57 = vpop.f32.mrb[11].mxu1 }
 0x28b   : > { %v2845_v47 = vadd.f32 %v4851_v9, %v2806_v26  ;;  %v2807_v45 = vmul.f32 %v4846_v52, %v2699_v57 }
 0x28c   : > { %v2879_v63 = vadd.f32 %v3167_v43, %v2847_v28  ;;  %v2848_v51 = vadd.f32 %v4851_v9, %v2809_v54 }
 0x28d   : > { %v2877_v44 = vadd.f32 %v3168_v23, %v2845_v47  ;;  %v2846_v34 = vadd.f32 %v4851_v9, %v2807_v45  ;;  %v3179_v47 = vld [vmem:[%s3273_s20 + $0xb0] sm:$0xff] }
 0x28e   : > { %2911 = vst.msk [vmem:[%s4862_s27 + $0x50] sm:$0xff] %vm410_vm1, %v2879_v63  ;;  %v2880_v37 = vadd.f32 %v3169_v50, %v2848_v51  ;;  %v3180_v63 = vld [vmem:[%s3273_s20 + $0xa0] sm:$0xff]  ;;  %v3182_v50 = vld [vmem:[%s3273_s20 + $0xa8] sm:$0xff] }
 0x28f   : > { %2909 = vst.msk [vmem:[%s4862_s27 + $0x40] sm:$0xff] %vm410_vm1, %v2877_v44  ;;  %v2878_v12 = vadd.f32 %v3170_v61, %v2846_v34  ;;  %v3181_v44 = vld [vmem:[%s3273_s20 + $0xb8] sm:$0xff] }
 0x290   : > { %2912 = vst.msk [vmem:[%s4862_s27 + $0x58] sm:$0xff] %vm410_vm1, %v2880_v37 }
 0x291   : > { %2910 = vst.msk [vmem:[%s4862_s27 + $0x48] sm:$0xff] %vm410_vm1, %v2878_v12 }
 0x297   : > { %v3129_v17 = vpop.f32.mrb[12].mxu1 }
 0x298   : > { %v2812_v46 = vmul.f32 %v3129_v17, %v4846_v52  ;;  %v2712_v0 = vpop.f32.mrb[13].mxu1 }
 0x299   : > { %v2810_v53 = vmul.f32 %v4846_v52, %v2712_v0  ;;  %v3130_v16 = vpop.f32.mrb[14].mxu1 }
 0x29a   : > { %v2851_v7 = vadd.f32 %v4851_v9, %v2812_v46  ;;  %v2813_v10 = vmul.f32 %v3130_v16, %v4846_v52  ;;  %v2715_v8 = vpop.f32.mrb[15].mxu1 }
 0x29b   : > { %v2849_v48 = vadd.f32 %v4851_v9, %v2810_v53  ;;  %v2811_v14 = vmul.f32 %v4846_v52, %v2715_v8 }
 0x29c   : > { %v2883_v59 = vadd.f32 %v3171_v20, %v2851_v7  ;;  %v2852_v56 = vadd.f32 %v4851_v9, %v2813_v10 }
 0x29d   : > { %v2881_v35 = vadd.f32 %v3172_v21, %v2849_v48  ;;  %v2850_v1 = vadd.f32 %v4851_v9, %v2811_v14  ;;  %v3183_v48 = vld [vmem:[%s3273_s20 + $0xd0] sm:$0xff] }
 0x29e   : > { %2915 = vst.msk [vmem:[%s4862_s27 + $0x70] sm:$0xff] %vm410_vm1, %v2883_v59  ;;  %v2884_v39 = vadd.f32 %v3173_v25, %v2852_v56  ;;  %v3184_v59 = vld [vmem:[%s3273_s20 + $0xc0] sm:$0xff]  ;;  %v3186_v25 = vld [vmem:[%s3273_s20 + $0xc8] sm:$0xff] }
 0x29f   : > { %2913 = vst.msk [vmem:[%s4862_s27 + $0x60] sm:$0xff] %vm410_vm1, %v2881_v35  ;;  %v2882_v49 = vadd.f32 %v3174_v5, %v2850_v1  ;;  %v3185_v35 = vld [vmem:[%s3273_s20 + $0xd8] sm:$0xff] }
 0x2a0   : > { %2916 = vst.msk [vmem:[%s4862_s27 + $0x78] sm:$0xff] %vm410_vm1, %v2884_v39 }
 0x2a1   : > { %2914 = vst.msk [vmem:[%s4862_s27 + $0x68] sm:$0xff] %vm410_vm1, %v2882_v49 }
 0x2a7   : > { %v3133_v15 = vpop.f32.mrb[16].mxu1 }
 0x2a8   : > { %v2816_v3 = vmul.f32 %v3133_v15, %v4846_v52  ;;  %v2728_v33 = vpop.f32.mrb[17].mxu1 }
 0x2a9   : > { %v2814_v13 = vmul.f32 %v4846_v52, %v2728_v33  ;;  %v3134_v30 = vpop.f32.mrb[18].mxu1 }
 0x2aa   : > { %v2855_v41 = vadd.f32 %v4851_v9, %v2816_v3  ;;  %v2817_v36 = vmul.f32 %v3134_v30, %v4846_v52  ;;  %v2731_v29 = vpop.f32.mrb[19].mxu1 }
 0x2ab   : > { %v2853_v38 = vadd.f32 %v4851_v9, %v2814_v13  ;;  %v2815_v27 = vmul.f32 %v4846_v52, %v2731_v29 }
 0x2ac   : > { %v2887_v19 = vadd.f32 %v3175_v2, %v2855_v41  ;;  %v2856_v62 = vadd.f32 %v4851_v9, %v2817_v36 }
 0x2ad   : > { %v2885_v4 = vadd.f32 %v3176_v24, %v2853_v38  ;;  %v2854_v55 = vadd.f32 %v4851_v9, %v2815_v27  ;;  %v3187_v38 = vld [vmem:[%s3273_s20 + $0xf0] sm:$0xff] }
 0x2ae   : > { %2919 = vst.msk [vmem:[%s4862_s27 + $0x90] sm:$0xff] %vm410_vm1, %v2887_v19  ;;  %v2888_v58 = vadd.f32 %v3177_v40, %v2856_v62  ;;  %v3188_v19 = vld [vmem:[%s3273_s20 + $0xe0] sm:$0xff]  ;;  %v3190_v40 = vld [vmem:[%s3273_s20 + $0xe8] sm:$0xff] }
 0x2af   : > { %2917 = vst.msk [vmem:[%s4862_s27 + $0x80] sm:$0xff] %vm410_vm1, %v2885_v4  ;;  %v2886_v42 = vadd.f32 %v3178_v18, %v2854_v55  ;;  %v3189_v4 = vld [vmem:[%s3273_s20 + $0xf8] sm:$0xff] }
 0x2b0   : > { %2920 = vst.msk [vmem:[%s4862_s27 + $0x98] sm:$0xff] %vm410_vm1, %v2888_v58 }
 0x2b1   : > { %2918 = vst.msk [vmem:[%s4862_s27 + $0x88] sm:$0xff] %vm410_vm1, %v2886_v42 }
 0x2b7   : > { %v3137_v22 = vpop.f32.mrb[20].mxu1 }
 0x2b8   : > { %v2820_v31 = vmul.f32 %v3137_v22, %v4846_v52  ;;  %v2744_v6 = vpop.f32.mrb[21].mxu1 }
 0x2b9   : > { %v2818_v11 = vmul.f32 %v4846_v52, %v2744_v6  ;;  %v3138_v60 = vpop.f32.mrb[22].mxu1 }
 0x2ba   : > { %v2859_v26 = vadd.f32 %v4851_v9, %v2820_v31  ;;  %v2821_v32 = vmul.f32 %v3138_v60, %v4846_v52  ;;  %v2747_v28 = vpop.f32.mrb[23].mxu1 }
 0x2bb   : > { %v2857_v54 = vadd.f32 %v4851_v9, %v2818_v11  ;;  %v2819_v57 = vmul.f32 %v4846_v52, %v2747_v28 }
 0x2bc   : > { %v2891_v45 = vadd.f32 %v3179_v47, %v2859_v26  ;;  %v2860_v43 = vadd.f32 %v4851_v9, %v2821_v32 }
 0x2bd   : > { %v2889_v51 = vadd.f32 %v3180_v63, %v2857_v54  ;;  %v2858_v23 = vadd.f32 %v4851_v9, %v2819_v57 }
 0x2be   : > { %2923 = vst.msk [vmem:[%s4862_s27 + $0xb0] sm:$0xff] %vm410_vm1, %v2891_v45  ;;  %v2892_v34 = vadd.f32 %v3181_v44, %v2860_v43 }
 0x2bf   : > { %2921 = vst.msk [vmem:[%s4862_s27 + $0xa0] sm:$0xff] %vm410_vm1, %v2889_v51  ;;  %v2890_v37 = vadd.f32 %v3182_v50, %v2858_v23 }
 0x2c0   : > { %2924 = vst.msk [vmem:[%s4862_s27 + $0xb8] sm:$0xff] %vm410_vm1, %v2892_v34 }
 0x2c1   : > { %2922 = vst.msk [vmem:[%s4862_s27 + $0xa8] sm:$0xff] %vm410_vm1, %v2890_v37 }
 0x2c7   : > { %v3141_v61 = vpop.f32.mrb[24].mxu1 }
 0x2c8   : > { %v2824_v12 = vmul.f32 %v3141_v61, %v4846_v52  ;;  %v2760_v17 = vpop.f32.mrb[25].mxu1 }
 0x2c9   : > { %v2822_v46 = vmul.f32 %v4846_v52, %v2760_v17  ;;  %v3142_v0 = vpop.f32.mrb[26].mxu1 }
 0x2ca   : > { %v2863_v53 = vadd.f32 %v4851_v9, %v2824_v12  ;;  %v2825_v16 = vmul.f32 %v3142_v0, %v4846_v52  ;;  %v2763_v7 = vpop.f32.mrb[27].mxu1 }
 0x2cb   : > { %v2861_v10 = vadd.f32 %v4851_v9, %v2822_v46  ;;  %v2823_v8 = vmul.f32 %v4846_v52, %v2763_v7 }
 0x2cc   : > { %v2895_v14 = vadd.f32 %v3183_v48, %v2863_v53  ;;  %v2864_v20 = vadd.f32 %v4851_v9, %v2825_v16 }
 0x2cd   : > { %v2893_v56 = vadd.f32 %v3184_v59, %v2861_v10  ;;  %v2862_v21 = vadd.f32 %v4851_v9, %v2823_v8 }
 0x2ce   : > { %2927 = vst.msk [vmem:[%s4862_s27 + $0xd0] sm:$0xff] %vm410_vm1, %v2895_v14  ;;  %v2896_v1 = vadd.f32 %v3185_v35, %v2864_v20 }
 0x2cf   : > { %2925 = vst.msk [vmem:[%s4862_s27 + $0xc0] sm:$0xff] %vm410_vm1, %v2893_v56  ;;  %v2894_v39 = vadd.f32 %v3186_v25, %v2862_v21 }
 0x2d0   : > { %2928 = vst.msk [vmem:[%s4862_s27 + $0xd8] sm:$0xff] %vm410_vm1, %v2896_v1 }
 0x2d1   : > { %2926 = vst.msk [vmem:[%s4862_s27 + $0xc8] sm:$0xff] %vm410_vm1, %v2894_v39  ;;  %v3145_v5 = vpop.f32.mrb[28].mxu1 }
 0x2d2   : > { %v2828_v49 = vmul.f32 %v3145_v5, %v4846_v52  ;;  %v2776_v15 = vpop.f32.mrb[29].mxu1 }
 0x2d3   : > { %v2826_v3 = vmul.f32 %v4846_v52, %v2776_v15  ;;  %v3146_v33 = vpop.f32.mrb[30].mxu1 }
 0x2d4   : > { %v2867_v13 = vadd.f32 %v4851_v9, %v2828_v49  ;;  %v2829_v30 = vmul.f32 %v3146_v33, %v4846_v52  ;;  %v2779_v41 = vpop.f32.mrb[31].mxu1 }
 0x2d5   : > { %v2865_v36 = vadd.f32 %v4851_v9, %v2826_v3  ;;  %v2827_v29 = vmul.f32 %v4846_v52, %v2779_v41 }
 0x2d6   : > { %v2899_v27 = vadd.f32 %v3187_v38, %v2867_v13  ;;  %v2868_v2 = vadd.f32 %v4851_v9, %v2829_v30 }
 0x2d7   : > { %v2897_v62 = vadd.f32 %v3188_v19, %v2865_v36  ;;  %v2866_v24 = vadd.f32 %v4851_v9, %v2827_v29 }
 0x2d8   : > { %2931 = vst.msk [vmem:[%s4862_s27 + $0xf0] sm:$0xff] %vm410_vm1, %v2899_v27  ;;  %v2900_v55 = vadd.f32 %v3189_v4, %v2868_v2 }
 0x2d9   : > { %2929 = vst.msk [vmem:[%s4862_s27 + $0xe0] sm:$0xff] %vm410_vm1, %v2897_v62  ;;  %v2898_v58 = vadd.f32 %v3190_v40, %v2866_v24 }
 0x2da   : > { %2932 = vst.msk [vmem:[%s4862_s27 + $0xf8] sm:$0xff] %vm410_vm1, %v2900_v55 }
 0x2db   : > { %2930 = vst.msk [vmem:[%s4862_s27 + $0xe8] sm:$0xff] %vm410_vm1, %v2898_v58 }
 0x2dc PF: > { %s20_s13 = sadd.s32 1, %s3197_s13  }
 0x2dd   : > { %p17_p4 = scmp.ge.s32.totalorder %s20_s13, 4  }
 0x2df   :  { %19 = sbr.rel (!%p17_p4) target bundleno = 1 (0x1), region = 90 }

</bundles_post_ra>
